<compile_context>
chip_gen: v5e
topology: v5e:2x2
jax: 0.10.0
libtpu: 0.0.40
codegen_flags: <defaults>
</compile_context>

<pallas_src>
import math
import functools

import numpy as np
import jax
import jax.numpy as jnp
from jax import lax
from jax.experimental import pallas as pl
from jax.experimental.pallas import tpu as pltpu

# ----------------------------- configuration --------------------------------
BATCH = 2
CHANNELS = 16
HEIGHT = 8
WIDTH = 8
N_HEAD = 2
NORM_GROUPS = 4
EPS = 1e-5

SEQ = HEIGHT * WIDTH
HEAD_DIM = CHANNELS // N_HEAD


# ------------------------------- kernel -------------------------------------
def self_attention_kernel(x_ref, wqkv_ref, wout_ref, pvec_ref, o_ref, *,
                          n_head, norm_groups, batch, seq):
    x = x_ref[...]                                   # (C, B*S) f32, channels on sublanes
    C, BS = x.shape
    B, S = batch, seq
    D = C // n_head
    G = norm_groups
    gsize = C // G

    lane = lax.broadcasted_iota(jnp.int32, (C, BS), 1)   # fused (batch, token) index
    chan = lax.broadcasted_iota(jnp.int32, (C, BS), 0)   # channel index

    # ---- GroupNorm statistics per (batch, group) on the VPU/XLU (no MXU) ----
    # Stage 1: per-(channel, batch) sums of x and x^2, broadcast back over lanes.
    x2 = x * x
    s1 = jnp.zeros_like(x)
    s2 = jnp.zeros_like(x)
    for b in range(B):
        mb = (lane >= b * S) & (lane < (b + 1) * S)
        r1 = jnp.sum(jnp.where(mb, x, 0.0), axis=1, keepdims=True)    # (C, 1)
        r2 = jnp.sum(jnp.where(mb, x2, 0.0), axis=1, keepdims=True)
        s1 = jnp.where(mb, r1, s1)
        s2 = jnp.where(mb, r2, s2)
    # Stage 2: sum the stage-1 rows over each channel group (sublane reduce).
    g1 = jnp.zeros_like(x)
    g2 = jnp.zeros_like(x)
    for g in range(G):
        mg = (chan >= g * gsize) & (chan < (g + 1) * gsize)
        t1 = jnp.sum(jnp.where(mg, s1, 0.0), axis=0, keepdims=True)   # (1, BS)
        t2 = jnp.sum(jnp.where(mg, s2, 0.0), axis=0, keepdims=True)
        g1 = jnp.where(mg, t1, g1)
        g2 = jnp.where(mg, t2, g2)
    inv_n = 1.0 / (gsize * S)
    mean = g1 * inv_n
    var = g2 * inv_n - mean * mean                   # one-pass variance, f32
    xn = (x - mean) * lax.rsqrt(var + EPS)           # gamma/beta folded into qkv weight/bias

    # ---- qkv 1x1 conv: (3C, C) @ (C, B*S); bf16 operands, f32 accumulation ----
    pv = pvec_ref[...]                               # (4C, 1) f32 = [qkv bias | out bias]
    b_qkv = pv[0:3 * C, :]
    b_out = pv[3 * C:, :]
    qkv = jnp.dot(wqkv_ref[...], xn.astype(jnp.bfloat16),
                  preferred_element_type=jnp.float32) + b_qkv          # (3C, BS) f32

    # Head-major channel layout: per head the 3*D rows are [q | k | v].
    qkv_h = qkv.reshape(n_head, 3 * D, BS)           # sublane-aligned split (3D = 24)
    q_t = jnp.swapaxes(qkv_h[:, 0 * D:1 * D, :], 1, 2).astype(jnp.bfloat16)  # (H, BS, D)
    k = qkv_h[:, 1 * D:2 * D, :].astype(jnp.bfloat16)                        # (H, D, BS)
    v = qkv_h[:, 2 * D:3 * D, :].astype(jnp.bfloat16)                        # (H, D, BS)

    # Scores over the fused (batch, token) axis; cross-batch pairs masked out.
    # (1/sqrt(C) is already folded into the q rows of the qkv weight/bias.)
    s = lax.dot_general(q_t, k, (((2,), (1,)), ((0,), (0,))),
                        preferred_element_type=jnp.float32)            # (H, BS, BS)
    ii = lax.broadcasted_iota(jnp.int32, (BS, BS), 0)
    jj = lax.broadcasted_iota(jnp.int32, (BS, BS), 1)
    bi = jnp.zeros((BS, BS), jnp.int32)
    bj = jnp.zeros((BS, BS), jnp.int32)
    for b in range(1, B):                            # batch id without vector int-div
        bi = bi + jnp.where(ii >= b * S, 1, 0)
        bj = bj + jnp.where(jj >= b * S, 1, 0)
    s = s + jnp.where(bi == bj, 0.0, -1e30)          # block-diagonal additive mask

    # Softmax over keys (f32 stats; approx reciprocal runs on the EUP slot).
    s = s - jnp.max(s, axis=-1, keepdims=True)
    e = jnp.exp(s)
    p = e * pl.reciprocal(jnp.sum(e, axis=-1, keepdims=True), approx=True)
    p = p.astype(jnp.bfloat16)

    # o[h, d, i] = sum_j v[h, d, j] * p[h, i, j]
    o = lax.dot_general(v, p, (((2,), (2,)), ((0,), (0,))),
                        preferred_element_type=jnp.float32)            # (H, D, BS)
    o = o.reshape(C, BS).astype(jnp.bfloat16)        # heads stacked back onto channels

    # ---- 1x1 output conv (+bias) and residual ----
    y = jnp.dot(wout_ref[...], o, preferred_element_type=jnp.float32)  # (C, BS) f32
    o_ref[...] = y + b_out + x


# ------------------------------- wrapper -------------------------------------
def self_attention_pallas(x_nchw, gn_w, gn_b, w_qkv_conv, w_out_conv, b_out,
                          *, n_head, norm_groups):
    B, C, H, W = x_nchw.shape
    S = H * W
    BS = B * S
    D = C // n_head

    # (B, C, H, W) -> (C, B*S): tiny wrapper-side layout plumbing so the kernel
    # sees a fully lane-dense token slab (here exactly (16, 128)).
    x_tok = jnp.transpose(x_nchw.reshape(B, C, S), (1, 0, 2)).reshape(C, BS)

    # 1x1 conv weights used directly in (out_ch, in_ch) orientation.
    w_qkv = w_qkv_conv.reshape(3 * C, C)
    w_out = w_out_conv.reshape(C, C)

    # Fold GroupNorm affine into the qkv conv:  W' = W diag(gamma), b' = W @ beta,
    # then fold the attention scale 1/sqrt(C) into the q rows of both.
    row = np.arange(3 * C)
    qscale = jnp.asarray(
        np.where((row // D) % 3 == 0, 1.0 / math.sqrt(C), 1.0).astype(np.float32))
    w_qkv_f = (w_qkv * gn_w[None, :]) * qscale[:, None]
    b_qkv = (w_qkv @ gn_b) * qscale

    # Pack every per-channel vector into ONE (4C, 1) f32 input (single DMA).
    pvec = jnp.concatenate([b_qkv, b_out]).reshape(4 * C, 1).astype(jnp.float32)
    w_qkv_bf = w_qkv_f.astype(jnp.bfloat16)
    w_out_bf = w_out.astype(jnp.bfloat16)

    kernel = functools.partial(self_attention_kernel, n_head=n_head,
                               norm_groups=norm_groups, batch=B, seq=S)

    out_tok = pl.pallas_call(
        kernel,
        out_shape=jax.ShapeDtypeStruct((C, BS), jnp.float32),
        grid_spec=pltpu.PrefetchScalarGridSpec(
            num_scalar_prefetch=0,
            grid=(1,),
            in_specs=[
                pl.BlockSpec((C, BS), lambda i: (0, 0)),         # x tokens (f32)
                pl.BlockSpec((3 * C, C), lambda i: (0, 0)),      # folded qkv weight (bf16)
                pl.BlockSpec((C, C), lambda i: (0, 0)),          # out weight (bf16)
                pl.BlockSpec((4 * C, 1), lambda i: (0, 0)),      # packed biases (f32)
            ],
            out_specs=pl.BlockSpec((C, BS), lambda i: (0, 0)),   # lane-dense output
        ),
        compiler_params=pltpu.CompilerParams(
            dimension_semantics=("arbitrary",)),
    )(x_tok, w_qkv_bf, w_out_bf, pvec)

    # (C, B*S) -> (B, C, H, W)
    return jnp.transpose(out_tok.reshape(C, B, S), (1, 0, 2)).reshape(B, C, H, W)


# --------------------------- pure-JAX reference ------------------------------
def self_attention_reference(x, gn_w, gn_b, w_qkv_conv, w_out_conv, b_out,
                             *, n_head, norm_groups):
    B, C, H, W = x.shape
    D = C // n_head
    # GroupNorm
    xg = x.reshape(B, norm_groups, C // norm_groups, H, W)
    mean = xg.mean(axis=(2, 3, 4), keepdims=True)
    var = ((xg - mean) ** 2).mean(axis=(2, 3, 4), keepdims=True)
    xn = ((xg - mean) / jnp.sqrt(var + EPS)).reshape(B, C, H, W)
    xn = xn * gn_w[None, :, None, None] + gn_b[None, :, None, None]
    # qkv 1x1 conv (no bias)
    qkv = jnp.einsum('oc,bchw->bohw', w_qkv_conv.reshape(3 * C, C), xn)
    qkv = qkv.reshape(B, n_head, 3 * D, H, W)
    q, k, v = jnp.split(qkv, 3, axis=2)
    attn = jnp.einsum('bnchw,bncyx->bnhwyx', q, k) / math.sqrt(C)
    attn = attn.reshape(B, n_head, H, W, -1)
    attn = jax.nn.softmax(attn, axis=-1)
    attn = attn.reshape(B, n_head, H, W, H, W)
    out = jnp.einsum('bnhwyx,bncyx->bnchw', attn, v).reshape(B, C, H, W)
    out = jnp.einsum('oc,bchw->bohw', w_out_conv.reshape(C, C), out)
    out = out + b_out[None, :, None, None]
    return out + x


# --------------------------------- main --------------------------------------
if __name__ == "__main__":
    key = jax.random.PRNGKey(0)
    kx, k1, k2, k3, k4, k5 = jax.random.split(key, 6)

    x = jax.random.normal(kx, (BATCH, CHANNELS, HEIGHT, WIDTH), jnp.float32)

    # Deterministic synthetic parameters (shapes per the module __init__).
    gn_w = 1.0 + 0.1 * jax.random.normal(k1, (CHANNELS,), jnp.float32)
    gn_b = 0.1 * jax.random.normal(k2, (CHANNELS,), jnp.float32)
    w_qkv_conv = 0.05 * jax.random.normal(k3, (3 * CHANNELS, CHANNELS, 1, 1), jnp.float32)
    w_out_conv = 0.05 * jax.random.normal(k4, (CHANNELS, CHANNELS, 1, 1), jnp.float32)
    b_out = 0.05 * jax.random.normal(k5, (CHANNELS,), jnp.float32)

    out = self_attention_pallas(x, gn_w, gn_b, w_qkv_conv, w_out_conv, b_out,
                                n_head=N_HEAD, norm_groups=NORM_GROUPS)
    out = jax.block_until_ready(out)

    ref = self_attention_reference(x, gn_w, gn_b, w_qkv_conv, w_out_conv, b_out,
                                   n_head=N_HEAD, norm_groups=NORM_GROUPS)
    np.testing.assert_allclose(np.asarray(out), np.asarray(ref),
                               rtol=2e-3, atol=2e-3)
    print("KERNEL_OK")
</pallas_src>

<mosaic_0001>
module attributes {stable_mosaic.version = 11 : i64} {
  func.func @self_attention_kernel(%arg0: i32, %arg1: memref<16x128xf32, #tpu.memory_space<vmem>>, %arg2: memref<48x16xbf16, #tpu.memory_space<vmem>>, %arg3: memref<16x16xbf16, #tpu.memory_space<vmem>>, %arg4: memref<64x1xf32, #tpu.memory_space<vmem>>, %arg5: memref<16x128xf32, #tpu.memory_space<vmem>>) attributes {dimension_semantics = [#tpu.dimension_semantics<arbitrary>], iteration_bounds = array<i64: 1>, scalar_prefetch = 0 : i64, scratch_operands = 0 : i64, tpu.core_type = #tpu.core_type<tc>, window_params = [{pipeline_mode = #tpu.pipeline_mode<synchronous>, transform_indices = @transform_0, window_bounds = array<i64: 16, 128>}, {pipeline_mode = #tpu.pipeline_mode<synchronous>, transform_indices = @transform_1, window_bounds = array<i64: 48, 16>}, {pipeline_mode = #tpu.pipeline_mode<synchronous>, transform_indices = @transform_2, window_bounds = array<i64: 16, 16>}, {pipeline_mode = #tpu.pipeline_mode<synchronous>, transform_indices = @transform_3, window_bounds = array<i64: 64, 1>}, {pipeline_mode = #tpu.pipeline_mode<synchronous>, transform_indices = @transform_4, window_bounds = array<i64: 16, 128>}]} {
    %c0 = arith.constant 0 : index
    %c0_0 = arith.constant 0 : index
    %0 = vector.load %arg1[%c0, %c0_0] : memref<16x128xf32, #tpu.memory_space<vmem>>, vector<16x128xf32>
    %1 = tpu.iota {dimensions = array<i32: 1>} : vector<16x128xi32>
    %2 = tpu.iota {dimensions = array<i32: 0>} : vector<16x128xi32>
    %3 = arith.mulf %0, %0 : vector<16x128xf32>
    %cst = arith.constant 0.000000e+00 : f32
    %4 = vector.broadcast %cst : f32 to vector<16x128xf32>
    %cst_1 = arith.constant 0.000000e+00 : f32
    %5 = vector.broadcast %cst_1 : f32 to vector<16x128xf32>
    %c0_i32 = arith.constant 0 : i32
    %6 = vector.broadcast %c0_i32 : i32 to vector<16x128xi32>
    %7 = arith.cmpi sge, %1, %6 : vector<16x128xi32>
    %c64_i32 = arith.constant 64 : i32
    %8 = vector.broadcast %c64_i32 : i32 to vector<16x128xi32>
    %9 = arith.cmpi slt, %1, %8 : vector<16x128xi32>
    %10 = arith.andi %7, %9 : vector<16x128xi1>
    %cst_2 = arith.constant 0.000000e+00 : f32
    %11 = vector.broadcast %cst_2 : f32 to vector<16x128xf32>
    %12 = arith.select %10, %0, %11 : vector<16x128xi1>, vector<16x128xf32>
    %cst_3 = arith.constant dense<0.000000e+00> : vector<16xf32>
    %13 = vector.multi_reduction <add>, %12, %cst_3 [1] : vector<16x128xf32> to vector<16xf32>
    %14 = vector.shape_cast %13 : vector<16xf32> to vector<16x1xf32>
    %cst_4 = arith.constant 0.000000e+00 : f32
    %15 = vector.broadcast %cst_4 : f32 to vector<16x128xf32>
    %16 = arith.select %10, %3, %15 : vector<16x128xi1>, vector<16x128xf32>
    %cst_5 = arith.constant dense<0.000000e+00> : vector<16xf32>
    %17 = vector.multi_reduction <add>, %16, %cst_5 [1] : vector<16x128xf32> to vector<16xf32>
    %18 = vector.shape_cast %17 : vector<16xf32> to vector<16x1xf32>
    %19 = vector.shape_cast %14 : vector<16x1xf32> to vector<16x1xf32>
    %20 = vector.broadcast %19 : vector<16x1xf32> to vector<16x128xf32>
    %21 = arith.select %10, %20, %4 : vector<16x128xi1>, vector<16x128xf32>
    %22 = vector.shape_cast %18 : vector<16x1xf32> to vector<16x1xf32>
    %23 = vector.broadcast %22 : vector<16x1xf32> to vector<16x128xf32>
    %24 = arith.select %10, %23, %5 : vector<16x128xi1>, vector<16x128xf32>
    %c64_i32_6 = arith.constant 64 : i32
    %25 = vector.broadcast %c64_i32_6 : i32 to vector<16x128xi32>
    %26 = arith.cmpi sge, %1, %25 : vector<16x128xi32>
    %c128_i32 = arith.constant 128 : i32
    %27 = vector.broadcast %c128_i32 : i32 to vector<16x128xi32>
    %28 = arith.cmpi slt, %1, %27 : vector<16x128xi32>
    %29 = arith.andi %26, %28 : vector<16x128xi1>
    %cst_7 = arith.constant 0.000000e+00 : f32
    %30 = vector.broadcast %cst_7 : f32 to vector<16x128xf32>
    %31 = arith.select %29, %0, %30 : vector<16x128xi1>, vector<16x128xf32>
    %cst_8 = arith.constant dense<0.000000e+00> : vector<16xf32>
    %32 = vector.multi_reduction <add>, %31, %cst_8 [1] : vector<16x128xf32> to vector<16xf32>
    %33 = vector.shape_cast %32 : vector<16xf32> to vector<16x1xf32>
    %cst_9 = arith.constant 0.000000e+00 : f32
    %34 = vector.broadcast %cst_9 : f32 to vector<16x128xf32>
    %35 = arith.select %29, %3, %34 : vector<16x128xi1>, vector<16x128xf32>
    %cst_10 = arith.constant dense<0.000000e+00> : vector<16xf32>
    %36 = vector.multi_reduction <add>, %35, %cst_10 [1] : vector<16x128xf32> to vector<16xf32>
    %37 = vector.shape_cast %36 : vector<16xf32> to vector<16x1xf32>
    %38 = vector.shape_cast %33 : vector<16x1xf32> to vector<16x1xf32>
    %39 = vector.broadcast %38 : vector<16x1xf32> to vector<16x128xf32>
    %40 = arith.select %29, %39, %21 : vector<16x128xi1>, vector<16x128xf32>
    %41 = vector.shape_cast %37 : vector<16x1xf32> to vector<16x1xf32>
    %42 = vector.broadcast %41 : vector<16x1xf32> to vector<16x128xf32>
    %43 = arith.select %29, %42, %24 : vector<16x128xi1>, vector<16x128xf32>
    %cst_11 = arith.constant 0.000000e+00 : f32
    %44 = vector.broadcast %cst_11 : f32 to vector<16x128xf32>
    %cst_12 = arith.constant 0.000000e+00 : f32
    %45 = vector.broadcast %cst_12 : f32 to vector<16x128xf32>
    %c0_i32_13 = arith.constant 0 : i32
    %46 = vector.broadcast %c0_i32_13 : i32 to vector<16x128xi32>
    %47 = arith.cmpi sge, %2, %46 : vector<16x128xi32>
    %c4_i32 = arith.constant 4 : i32
    %48 = vector.broadcast %c4_i32 : i32 to vector<16x128xi32>
    %49 = arith.cmpi slt, %2, %48 : vector<16x128xi32>
    %50 = arith.andi %47, %49 : vector<16x128xi1>
    %cst_14 = arith.constant 0.000000e+00 : f32
    %51 = vector.broadcast %cst_14 : f32 to vector<16x128xf32>
    %52 = arith.select %50, %40, %51 : vector<16x128xi1>, vector<16x128xf32>
    %cst_15 = arith.constant dense<0.000000e+00> : vector<128xf32>
    %53 = vector.multi_reduction <add>, %52, %cst_15 [0] : vector<16x128xf32> to vector<128xf32>
    %54 = vector.shape_cast %53 : vector<128xf32> to vector<1x128xf32>
    %cst_16 = arith.constant 0.000000e+00 : f32
    %55 = vector.broadcast %cst_16 : f32 to vector<16x128xf32>
    %56 = arith.select %50, %43, %55 : vector<16x128xi1>, vector<16x128xf32>
    %cst_17 = arith.constant dense<0.000000e+00> : vector<128xf32>
    %57 = vector.multi_reduction <add>, %56, %cst_17 [0] : vector<16x128xf32> to vector<128xf32>
    %58 = vector.shape_cast %57 : vector<128xf32> to vector<1x128xf32>
    %59 = vector.shape_cast %54 : vector<1x128xf32> to vector<1x128xf32>
    %60 = vector.broadcast %59 : vector<1x128xf32> to vector<16x128xf32>
    %61 = arith.select %50, %60, %44 : vector<16x128xi1>, vector<16x128xf32>
    %62 = vector.shape_cast %58 : vector<1x128xf32> to vector<1x128xf32>
    %63 = vector.broadcast %62 : vector<1x128xf32> to vector<16x128xf32>
    %64 = arith.select %50, %63, %45 : vector<16x128xi1>, vector<16x128xf32>
    %c4_i32_18 = arith.constant 4 : i32
    %65 = vector.broadcast %c4_i32_18 : i32 to vector<16x128xi32>
    %66 = arith.cmpi sge, %2, %65 : vector<16x128xi32>
    %c8_i32 = arith.constant 8 : i32
    %67 = vector.broadcast %c8_i32 : i32 to vector<16x128xi32>
    %68 = arith.cmpi slt, %2, %67 : vector<16x128xi32>
    %69 = arith.andi %66, %68 : vector<16x128xi1>
    %cst_19 = arith.constant 0.000000e+00 : f32
    %70 = vector.broadcast %cst_19 : f32 to vector<16x128xf32>
    %71 = arith.select %69, %40, %70 : vector<16x128xi1>, vector<16x128xf32>
    %cst_20 = arith.constant dense<0.000000e+00> : vector<128xf32>
    %72 = vector.multi_reduction <add>, %71, %cst_20 [0] : vector<16x128xf32> to vector<128xf32>
    %73 = vector.shape_cast %72 : vector<128xf32> to vector<1x128xf32>
    %cst_21 = arith.constant 0.000000e+00 : f32
    %74 = vector.broadcast %cst_21 : f32 to vector<16x128xf32>
    %75 = arith.select %69, %43, %74 : vector<16x128xi1>, vector<16x128xf32>
    %cst_22 = arith.constant dense<0.000000e+00> : vector<128xf32>
    %76 = vector.multi_reduction <add>, %75, %cst_22 [0] : vector<16x128xf32> to vector<128xf32>
    %77 = vector.shape_cast %76 : vector<128xf32> to vector<1x128xf32>
    %78 = vector.shape_cast %73 : vector<1x128xf32> to vector<1x128xf32>
    %79 = vector.broadcast %78 : vector<1x128xf32> to vector<16x128xf32>
    %80 = arith.select %69, %79, %61 : vector<16x128xi1>, vector<16x128xf32>
    %81 = vector.shape_cast %77 : vector<1x128xf32> to vector<1x128xf32>
    %82 = vector.broadcast %81 : vector<1x128xf32> to vector<16x128xf32>
    %83 = arith.select %69, %82, %64 : vector<16x128xi1>, vector<16x128xf32>
    %c8_i32_23 = arith.constant 8 : i32
    %84 = vector.broadcast %c8_i32_23 : i32 to vector<16x128xi32>
    %85 = arith.cmpi sge, %2, %84 : vector<16x128xi32>
    %c12_i32 = arith.constant 12 : i32
    %86 = vector.broadcast %c12_i32 : i32 to vector<16x128xi32>
    %87 = arith.cmpi slt, %2, %86 : vector<16x128xi32>
    %88 = arith.andi %85, %87 : vector<16x128xi1>
    %cst_24 = arith.constant 0.000000e+00 : f32
    %89 = vector.broadcast %cst_24 : f32 to vector<16x128xf32>
    %90 = arith.select %88, %40, %89 : vector<16x128xi1>, vector<16x128xf32>
    %cst_25 = arith.constant dense<0.000000e+00> : vector<128xf32>
    %91 = vector.multi_reduction <add>, %90, %cst_25 [0] : vector<16x128xf32> to vector<128xf32>
    %92 = vector.shape_cast %91 : vector<128xf32> to vector<1x128xf32>
    %cst_26 = arith.constant 0.000000e+00 : f32
    %93 = vector.broadcast %cst_26 : f32 to vector<16x128xf32>
    %94 = arith.select %88, %43, %93 : vector<16x128xi1>, vector<16x128xf32>
    %cst_27 = arith.constant dense<0.000000e+00> : vector<128xf32>
    %95 = vector.multi_reduction <add>, %94, %cst_27 [0] : vector<16x128xf32> to vector<128xf32>
    %96 = vector.shape_cast %95 : vector<128xf32> to vector<1x128xf32>
    %97 = vector.shape_cast %92 : vector<1x128xf32> to vector<1x128xf32>
    %98 = vector.broadcast %97 : vector<1x128xf32> to vector<16x128xf32>
    %99 = arith.select %88, %98, %80 : vector<16x128xi1>, vector<16x128xf32>
    %100 = vector.shape_cast %96 : vector<1x128xf32> to vector<1x128xf32>
    %101 = vector.broadcast %100 : vector<1x128xf32> to vector<16x128xf32>
    %102 = arith.select %88, %101, %83 : vector<16x128xi1>, vector<16x128xf32>
    %c12_i32_28 = arith.constant 12 : i32
    %103 = vector.broadcast %c12_i32_28 : i32 to vector<16x128xi32>
    %104 = arith.cmpi sge, %2, %103 : vector<16x128xi32>
    %c16_i32 = arith.constant 16 : i32
    %105 = vector.broadcast %c16_i32 : i32 to vector<16x128xi32>
    %106 = arith.cmpi slt, %2, %105 : vector<16x128xi32>
    %107 = arith.andi %104, %106 : vector<16x128xi1>
    %cst_29 = arith.constant 0.000000e+00 : f32
    %108 = vector.broadcast %cst_29 : f32 to vector<16x128xf32>
    %109 = arith.select %107, %40, %108 : vector<16x128xi1>, vector<16x128xf32>
    %cst_30 = arith.constant dense<0.000000e+00> : vector<128xf32>
    %110 = vector.multi_reduction <add>, %109, %cst_30 [0] : vector<16x128xf32> to vector<128xf32>
    %111 = vector.shape_cast %110 : vector<128xf32> to vector<1x128xf32>
    %cst_31 = arith.constant 0.000000e+00 : f32
    %112 = vector.broadcast %cst_31 : f32 to vector<16x128xf32>
    %113 = arith.select %107, %43, %112 : vector<16x128xi1>, vector<16x128xf32>
    %cst_32 = arith.constant dense<0.000000e+00> : vector<128xf32>
    %114 = vector.multi_reduction <add>, %113, %cst_32 [0] : vector<16x128xf32> to vector<128xf32>
    %115 = vector.shape_cast %114 : vector<128xf32> to vector<1x128xf32>
    %116 = vector.shape_cast %111 : vector<1x128xf32> to vector<1x128xf32>
    %117 = vector.broadcast %116 : vector<1x128xf32> to vector<16x128xf32>
    %118 = arith.select %107, %117, %99 : vector<16x128xi1>, vector<16x128xf32>
    %119 = vector.shape_cast %115 : vector<1x128xf32> to vector<1x128xf32>
    %120 = vector.broadcast %119 : vector<1x128xf32> to vector<16x128xf32>
    %121 = arith.select %107, %120, %102 : vector<16x128xi1>, vector<16x128xf32>
    %cst_33 = arith.constant 3.906250e-03 : f32
    %122 = vector.broadcast %cst_33 : f32 to vector<16x128xf32>
    %123 = arith.mulf %118, %122 : vector<16x128xf32>
    %cst_34 = arith.constant 3.906250e-03 : f32
    %124 = vector.broadcast %cst_34 : f32 to vector<16x128xf32>
    %125 = arith.mulf %121, %124 : vector<16x128xf32>
    %126 = arith.mulf %123, %123 : vector<16x128xf32>
    %127 = arith.subf %125, %126 : vector<16x128xf32>
    %128 = arith.subf %0, %123 : vector<16x128xf32>
    %cst_35 = arith.constant 9.99999974E-6 : f32
    %129 = vector.broadcast %cst_35 : f32 to vector<16x128xf32>
    %130 = arith.addf %127, %129 : vector<16x128xf32>
    %131 = math.rsqrt %130 : vector<16x128xf32>
    %132 = arith.mulf %128, %131 : vector<16x128xf32>
    %c0_36 = arith.constant 0 : index
    %c0_37 = arith.constant 0 : index
    %133 = vector.load %arg4[%c0_36, %c0_37] : memref<64x1xf32, #tpu.memory_space<vmem>>, vector<64x1xf32>
    %134 = vector.extract_strided_slice %133 {offsets = [0, 0], sizes = [48, 1], strides = [1, 1]} : vector<64x1xf32> to vector<48x1xf32>
    %135 = vector.extract_strided_slice %133 {offsets = [48, 0], sizes = [16, 1], strides = [1, 1]} : vector<64x1xf32> to vector<16x1xf32>
    %c0_38 = arith.constant 0 : index
    %c0_39 = arith.constant 0 : index
    %136 = vector.load %arg2[%c0_38, %c0_39] : memref<48x16xbf16, #tpu.memory_space<vmem>>, vector<48x16xbf16>
    %137 = arith.truncf %132 : vector<16x128xf32> to vector<16x128xbf16>
    %cst_40 = arith.constant dense<0.000000e+00> : vector<48x128xf32>
    %138 = tpu.matmul %136, %137, %cst_40 {dimension_numbers = #tpu.dot_dimension_numbers<[1], [0], [0], [1], [0, 0, 1, 1], [], []>} : vector<48x16xbf16>, vector<16x128xbf16>, vector<48x128xf32> -> vector<48x128xf32>
    %139 = vector.broadcast %134 : vector<48x1xf32> to vector<48x128xf32>
    %140 = arith.addf %138, %139 : vector<48x128xf32>
    %141 = vector.shape_cast %140 : vector<48x128xf32> to vector<2x24x128xf32>
    %142 = vector.extract_strided_slice %141 {offsets = [0, 0, 0], sizes = [2, 8, 128], strides = [1, 1, 1]} : vector<2x24x128xf32> to vector<2x8x128xf32>
    %143 = tpu.transpose %142, [0, 2, 1] : vector<2x8x128xf32> -> vector<2x128x8xf32>
    %144 = arith.truncf %143 : vector<2x128x8xf32> to vector<2x128x8xbf16>
    %145 = vector.extract_strided_slice %141 {offsets = [0, 8, 0], sizes = [2, 8, 128], strides = [1, 1, 1]} : vector<2x24x128xf32> to vector<2x8x128xf32>
    %146 = arith.truncf %145 : vector<2x8x128xf32> to vector<2x8x128xbf16>
    %147 = vector.extract_strided_slice %141 {offsets = [0, 16, 0], sizes = [2, 8, 128], strides = [1, 1, 1]} : vector<2x24x128xf32> to vector<2x8x128xf32>
    %148 = arith.truncf %147 : vector<2x8x128xf32> to vector<2x8x128xbf16>
    %cst_41 = arith.constant dense<0.000000e+00> : vector<2x128x128xf32>
    %149 = tpu.matmul %144, %146, %cst_41 {dimension_numbers = #tpu.dot_dimension_numbers<[2], [1], [1], [2], [0, 0, 0, 1, 1, 2], [0], [0]>} : vector<2x128x8xbf16>, vector<2x8x128xbf16>, vector<2x128x128xf32> -> vector<2x128x128xf32>
    %150 = tpu.iota {dimensions = array<i32: 0>} : vector<128x128xi32>
    %151 = tpu.iota {dimensions = array<i32: 1>} : vector<128x128xi32>
    %c0_i32_42 = arith.constant 0 : i32
    %152 = vector.broadcast %c0_i32_42 : i32 to vector<128x128xi32>
    %c0_i32_43 = arith.constant 0 : i32
    %153 = vector.broadcast %c0_i32_43 : i32 to vector<128x128xi32>
    %c64_i32_44 = arith.constant 64 : i32
    %154 = vector.broadcast %c64_i32_44 : i32 to vector<128x128xi32>
    %155 = arith.cmpi sge, %150, %154 : vector<128x128xi32>
    %c1_i32 = arith.constant 1 : i32
    %c0_i32_45 = arith.constant 0 : i32
    %156 = vector.broadcast %c1_i32 : i32 to vector<128x128xi32>
    %157 = vector.broadcast %c0_i32_45 : i32 to vector<128x128xi32>
    %158 = arith.select %155, %156, %157 : vector<128x128xi1>, vector<128x128xi32>
    %159 = arith.addi %152, %158 : vector<128x128xi32>
    %c64_i32_46 = arith.constant 64 : i32
    %160 = vector.broadcast %c64_i32_46 : i32 to vector<128x128xi32>
    %161 = arith.cmpi sge, %151, %160 : vector<128x128xi32>
    %c1_i32_47 = arith.constant 1 : i32
    %c0_i32_48 = arith.constant 0 : i32
    %162 = vector.broadcast %c1_i32_47 : i32 to vector<128x128xi32>
    %163 = vector.broadcast %c0_i32_48 : i32 to vector<128x128xi32>
    %164 = arith.select %161, %162, %163 : vector<128x128xi1>, vector<128x128xi32>
    %165 = arith.addi %153, %164 : vector<128x128xi32>
    %166 = arith.cmpi eq, %159, %165 : vector<128x128xi32>
    %cst_49 = arith.constant 0.000000e+00 : f32
    %cst_50 = arith.constant -1.000000e+30 : f32
    %167 = vector.broadcast %cst_49 : f32 to vector<128x128xf32>
    %168 = vector.broadcast %cst_50 : f32 to vector<128x128xf32>
    %169 = arith.select %166, %167, %168 : vector<128x128xi1>, vector<128x128xf32>
    %170 = vector.shape_cast %169 : vector<128x128xf32> to vector<1x128x128xf32>
    %171 = vector.broadcast %170 : vector<1x128x128xf32> to vector<2x128x128xf32>
    %172 = arith.addf %149, %171 : vector<2x128x128xf32>
    %cst_51 = arith.constant dense<0xFF800000> : vector<2x128xf32>
    %173 = vector.multi_reduction <maximumf>, %172, %cst_51 [2] : vector<2x128x128xf32> to vector<2x128xf32>
    %174 = vector.shape_cast %173 : vector<2x128xf32> to vector<2x128x1xf32>
    %175 = vector.broadcast %174 : vector<2x128x1xf32> to vector<2x128x128xf32>
    %176 = arith.subf %172, %175 : vector<2x128x128xf32>
    %177 = math.exp %176 : vector<2x128x128xf32>
    %cst_52 = arith.constant dense<0.000000e+00> : vector<2x128xf32>
    %178 = vector.multi_reduction <add>, %177, %cst_52 [2] : vector<2x128x128xf32> to vector<2x128xf32>
    %179 = vector.shape_cast %178 : vector<2x128xf32> to vector<2x128x1xf32>
    %180 = tpu.reciprocal %179 {approx = true} : vector<2x128x1xf32> -> vector<2x128x1xf32>
    %181 = vector.broadcast %180 : vector<2x128x1xf32> to vector<2x128x128xf32>
    %182 = arith.mulf %177, %181 : vector<2x128x128xf32>
    %183 = arith.truncf %182 : vector<2x128x128xf32> to vector<2x128x128xbf16>
    %cst_53 = arith.constant dense<0.000000e+00> : vector<2x8x128xf32>
    %184 = tpu.matmul %148, %183, %cst_53 {dimension_numbers = #tpu.dot_dimension_numbers<[2], [2], [1], [1], [0, 0, 0, 1, 1, 1], [0], [0]>} : vector<2x8x128xbf16>, vector<2x128x128xbf16>, vector<2x8x128xf32> -> vector<2x8x128xf32>
    %185 = vector.shape_cast %184 : vector<2x8x128xf32> to vector<16x128xf32>
    %186 = arith.truncf %185 : vector<16x128xf32> to vector<16x128xbf16>
    %c0_54 = arith.constant 0 : index
    %c0_55 = arith.constant 0 : index
    %187 = vector.load %arg3[%c0_54, %c0_55] : memref<16x16xbf16, #tpu.memory_space<vmem>>, vector<16x16xbf16>
    %cst_56 = arith.constant dense<0.000000e+00> : vector<16x128xf32>
    %188 = tpu.matmul %187, %186, %cst_56 {dimension_numbers = #tpu.dot_dimension_numbers<[1], [0], [0], [1], [0, 0, 1, 1], [], []>} : vector<16x16xbf16>, vector<16x128xbf16>, vector<16x128xf32> -> vector<16x128xf32>
    %189 = vector.broadcast %135 : vector<16x1xf32> to vector<16x128xf32>
    %190 = arith.addf %188, %189 : vector<16x128xf32>
    %191 = arith.addf %190, %0 : vector<16x128xf32>
    %c0_57 = arith.constant 0 : index
    %c0_58 = arith.constant 0 : index
    %192 = vector.load %arg5[%c0_57, %c0_58] : memref<16x128xf32, #tpu.memory_space<vmem>>, vector<16x128xf32>
    tpu.vector_store %arg5[%c0_57, %c0_58], %191 {strides = array<i32>} : memref<16x128xf32, #tpu.memory_space<vmem>>, vector<16x128xf32>,
    return
  }
  func.func @transform_0(%arg0: i32) -> (i32, i32) {
    %c0_i32 = arith.constant 0 : i32
    %c0_i32_0 = arith.constant 0 : i32
    %c0_i32_1 = arith.constant 0 : i32
    return %c0_i32, %c0_i32_0 : i32, i32
  }
  func.func @transform_1(%arg0: i32) -> (i32, i32) {
    %c0_i32 = arith.constant 0 : i32
    %c0_i32_0 = arith.constant 0 : i32
    %c0_i32_1 = arith.constant 0 : i32
    return %c0_i32, %c0_i32_0 : i32, i32
  }
  func.func @transform_2(%arg0: i32) -> (i32, i32) {
    %c0_i32 = arith.constant 0 : i32
    %c0_i32_0 = arith.constant 0 : i32
    %c0_i32_1 = arith.constant 0 : i32
    return %c0_i32, %c0_i32_0 : i32, i32
  }
  func.func @transform_3(%arg0: i32) -> (i32, i32) {
    %c0_i32 = arith.constant 0 : i32
    %c0_i32_0 = arith.constant 0 : i32
    %c0_i32_1 = arith.constant 0 : i32
    return %c0_i32, %c0_i32_0 : i32, i32
  }
  func.func @transform_4(%arg0: i32) -> (i32, i32) {
    %c0_i32 = arith.constant 0 : i32
    %c0_i32_0 = arith.constant 0 : i32
    %c0_i32_1 = arith.constant 0 : i32
    return %c0_i32, %c0_i32_0 : i32, i32
  }
}

</mosaic_0001>

<bundles_post_ra>
// kernel: tpu_custom_call.1
= control target key start
LH: loop header
LB: loop body
LE: loop exit
PB: predicated region body
PF: predicated region fallthrough
CT: control target
= control target key end

     0   :  { %v21_v0 = vlaneseq  ;;  %s2132_s0 = inlined_call_operand.vmem [shape: f32[16,128], index: 0, kind: input, shape index: {}]   ;;  %s2133_s1 = inlined_call_operand.vmem [shape: bf16[48,16], index: 1, kind: input, shape index: {}]   ;;  %s2134_s2 = inlined_call_operand.vmem [shape: bf16[16,16], index: 2, kind: input, shape index: {}]   ;;  %s2135_s3 = inlined_call_operand.vmem [shape: f32[64,1], index: 3, kind: input, shape index: {}]   ;;  %s2136_s4 = inlined_call_operand.hbm [shape: f32[16,128], index: 4, kind: output, shape index: {}]  }
   0x1   :  { %v1575_v1 = vld [vmem:[%s2132_s0] sm:$0xff] }
   0x2   :  { %9 = vsyncpa [#allocation3], 0  ;;  %v1577_v2 = vand.u32 127, %v21_v0  ;;  %v26_v3 = vmul.f32 %v1575_v1, %v1575_v1  ;;  %v1594_v7 = vld [vmem:[%s2132_s0 + $0x8] sm:$0xff]  ;;  %v1610_v14 = vshrl.u32 %v21_v0, 7  ;;  %vm272_vm12 = vcmask 130048  }
   0x3   :  { %v27_v8 = vmul.f32 %v1594_v7, %v1594_v7  ;;  %vm550_vm13 = vcmask 1043456   ;;  %vm525_vm14 = vcmask 64512   ;;  %s1544_s17 = smov [#allocation2]   ;;  %s1545_s23 = smov 128  }
   0x4   :  { %vm47_vm0 = vcmp.ge.s32.totalorder %v1577_v2, 64  ;;  %vm29_vm1 = vcmp.lt.s32.totalorder %v1577_v2, 64  ;;  %vm68_vm2 = vcmp.lt.s32.totalorder %v1610_v14, 4  ;;  %vm94_vm3 = vcmp.ge.s32.totalorder %v1610_v14, 4  ;;  %s1204_s18 = sshll.u32 %s1544_s17, 4  ;;  %s1546_s24 = smov 8   ;;  %s1205_s18 = int_to_ptr.vmem [resolvable:$true] %s1204_s18 }
   0x5   :  { %v50_v4 = vsel %vm47_vm0, %v1575_v1, 0.0  ;;  %v31_v5 = vsel %vm29_vm1, %v1575_v1, 0.0  ;;  %v37_v6 = vsel %vm29_vm1, %v26_v3, 0.0  ;;  %v51_v9 = vsel %vm47_vm0, %v1594_v7, 0.0 }
   0x6   :  { %52 = vadd.xlane.f32.xlu1 %v50_v4  ;;  %33 = vadd.xlane.f32.xlu0 %v31_v5  ;;  %v32_v10 = vsel %vm29_vm1, %v1594_v7, 0.0  ;;  %v38_v11 = vsel %vm29_vm1, %v27_v8, 0.0  ;;  %v57_v12 = vsel %vm47_vm0, %v27_v8, 0.0  ;;  %v56_v13 = vsel %vm47_vm0, %v26_v3, 0.0 }
   0x7   :  { %39 = vadd.xlane.f32.xlu2 %v37_v6  ;;  %v1623_v24 = vadd.s32 8, %v1610_v14  ;;  %v213_v14 = vld [vmem:[%s2135_s3 + $0x8] sm:$0xff] }
   0x9   :  { %vm125_vm4 = vcmp.lt.s32.totalorder %v1623_v24, 12  ;;  %vm151_vm5 = vcmp.ge.s32.totalorder %v1623_v24, 12 }
   0xe   :  { %54 = vadd.xlane.f32.xlu1 %v51_v9  ;;  %35 = vadd.xlane.f32.xlu0 %v32_v10 }
   0xf   :  { %41 = vadd.xlane.f32.xlu2 %v38_v11 }
  0x16   :  { %60 = vadd.xlane.f32.xlu1 %v57_v12  ;;  %58 = vadd.xlane.f32.xlu0 %v56_v13 }
  0x79   :  { %v53_v15 = vpop.xlane.xlu1 %52  ;;  %v34_v16 = vpop.xlane.xlu0 %33 }
  0x7a   :  { %v43_v17 = vsel %vm29_vm1, %v34_v16, 0.0  ;;  %v40_v18 = vpop.xlane.xlu2 %39 }
  0x7b   :  { %v62_v19 = vsel %vm47_vm0, %v53_v15, %v43_v17  ;;  %v45_v44 = vsel %vm29_vm1, %v40_v18, 0.0 }
  0x7c   :  { %v72_v20 = vsel %vm68_vm2, %v62_v19, 0.0  ;;  %v100_v21 = vsel %vm94_vm3, %v62_v19, 0.0 }
  0x7d   :  { %v75_v22 = vrot.slane %v72_v20, 4  ;;  %v103_v23 = vrot.slane %v100_v21, 4 }
  0x7f   :  { %v76_v25 = vadd.f32 %v75_v22, %v72_v20  ;;  %v104_v26 = vadd.f32 %v103_v23, %v100_v21 }
  0x81   :  { %v77_v27 = vrot.slane %v76_v25, 2  ;;  %v55_v28 = vpop.xlane.xlu1 %54  ;;  %v36_v29 = vpop.xlane.xlu0 %35  ;;  %v105_v30 = vrot.slane %v104_v26, 2 }
  0x82   :  { %v44_v31 = vsel %vm29_vm1, %v36_v29, 0.0  ;;  %v42_v36 = vpop.xlane.xlu2 %41 }
  0x83   :  { %v78_v32 = vadd.f32 %v77_v27, %v76_v25  ;;  %v63_v33 = vsel %vm47_vm0, %v55_v28, %v44_v31  ;;  %v106_v40 = vadd.f32 %v105_v30, %v104_v26  ;;  %v46_v43 = vsel %vm29_vm1, %v42_v36, 0.0 }
  0x84   :  { %v129_v34 = vsel %vm125_vm4, %v63_v33, 0.0  ;;  %v157_v35 = vsel %vm151_vm5, %v63_v33, 0.0 }
  0x85   :  { %v131_v37 = vrot.slane %v129_v34, 4  ;;  %v159_v38 = vrot.slane %v157_v35, 4  ;;  %v79_v39 = vrot.slane %v78_v32, 1  ;;  %v107_v50 = vrot.slane %v106_v40, 1 }
  0x87   :  { %v132_v41 = vadd.f32 %v131_v37, %v129_v34  ;;  %v160_v42 = vadd.f32 %v159_v38, %v157_v35  ;;  %v80_v49 = vadd.f32 %v79_v39, %v78_v32  ;;  %v108_v10 = vadd.f32 %v107_v50, %v106_v40 }
  0x89   :  { %v133_v45 = vrot.slane %v132_v41, 2  ;;  %v161_v46 = vrot.slane %v160_v42, 2  ;;  %v61_v47 = vpop.xlane.xlu1 %60  ;;  %v59_v48 = vpop.xlane.xlu0 %58  ;;  %v90_v16 = vsel %vm68_vm2, %v80_v49, 0.0 }
  0x8a   :  { %v65_v51 = vsel %vm47_vm0, %v61_v47, %v46_v43  ;;  %v64_v52 = vsel %vm47_vm0, %v59_v48, %v45_v44  ;;  %v118_v26 = vsel %vm94_vm3, %v108_v10, %v90_v16 }
  0x8b   :  { %v134_v53 = vadd.f32 %v133_v45, %v132_v41  ;;  %v162_v54 = vadd.f32 %v161_v46, %v160_v42  ;;  %v138_v55 = vsel %vm125_vm4, %v65_v51, 0.0  ;;  %v166_v56 = vsel %vm151_vm5, %v65_v51, 0.0 }
  0x8c   :  { %v140_v57 = vrot.slane %v138_v55, 4  ;;  %v168_v58 = vrot.slane %v166_v56, 4  ;;  %v81_v59 = vsel %vm68_vm2, %v64_v52, 0.0  ;;  %v109_v60 = vsel %vm94_vm3, %v64_v52, 0.0 }
  0x8d   :  { %v135_v61 = vrot.slane %v134_v53, 1  ;;  %v163_v62 = vrot.slane %v162_v54, 1  ;;  %v84_v63 = vrot.slane %v81_v59, 4  ;;  %v112_v0 = vrot.slane %v109_v60, 4 }
  0x8e   :  { %v141_v3 = vadd.f32 %v140_v57, %v138_v55  ;;  %v169_v4 = vadd.f32 %v168_v58, %v166_v56  ;;  %v178_v34 = vmul.f32 0.00390625, %v118_v26 }
  0x8f   :  { %v136_v5 = vadd.f32 %v135_v61, %v134_v53  ;;  %v164_v6 = vadd.f32 %v163_v62, %v162_v54  ;;  %v85_v8 = vadd.f32 %v84_v63, %v81_v59  ;;  %v113_v9 = vadd.f32 %v112_v0, %v109_v60 }
  0x90   :  { %v142_v11 = vrot.slane %v141_v3, 2  ;;  %v170_v12 = vrot.slane %v169_v4, 2  ;;  %v182_v42 = vmul.f32 %v178_v34, %v178_v34  ;;  %v1541_v53 = vmov 0  }
  0x91   :  { %v86_v13 = vrot.slane %v85_v8, 2  ;;  %v114_v15 = vrot.slane %v113_v9, 2  ;;  %v147_v17 = vsel %vm125_vm4, %v136_v5, 0.0  ;;  %1298 = vset.pattern.permute.xlu1 %v1541_v53  ;;  %1297 = vset.pattern.permute.xlu0 %v1541_v53  ;;  %v186_v60 = vsub.f32 %v1575_v1, %v178_v34  ;;  %v212_v1 = vld [vmem:[%s2135_s3] sm:$0xff] }
  0x92   :  { %v143_v18 = vadd.f32 %v142_v11, %v141_v3  ;;  %v171_v19 = vadd.f32 %v170_v12, %v169_v4  ;;  %v175_v22 = vsel %vm151_vm5, %v164_v6, %v147_v17  ;;  %234 = vperm.xlu1 %1298, %v213_v14   ;;  %1296 = vset.pattern.permute.xlu2 %v1541_v53  ;;  %v1270_v4 = vld [vmem:[%s2133_s1] sm:$0xff]  ;;  %v1271_v6 = vld [vmem:[%s2133_s1 + $0x8] sm:$0xff] }
  0x93   :  { %v87_v20 = vadd.f32 %v86_v13, %v85_v8  ;;  %v115_v21 = vadd.f32 %v114_v15, %v113_v9  ;;  %v179_v31 = vmul.f32 0.00390625, %v175_v22  ;;  %229 = vperm.xlu2 %1296, %v212_v1   ;;  %v216_v5 = vld [vmem:[%s2135_s3 + $0x20] sm:$0xff]  ;;  %v1272_v8 = vld [vmem:[%s2133_s1 + $0x10] sm:$0xff] }
  0x94   :  { %v144_v23 = vrot.slane %v143_v18, 1  ;;  %v172_v25 = vrot.slane %v171_v19, 1 }
  0x95   :  { %v88_v27 = vrot.slane %v87_v20, 1  ;;  %v116_v28 = vrot.slane %v115_v21, 1  ;;  %v183_v40 = vmul.f32 %v179_v31, %v179_v31  ;;  %v187_v58 = vsub.f32 %v1594_v7, %v179_v31  ;;  %v215_v7 = vld [vmem:[%s2135_s3 + $0x18] sm:$0xff] }
  0x96   :  { %v145_v29 = vadd.f32 %v144_v23, %v143_v18  ;;  %v173_v30 = vadd.f32 %v172_v25, %v171_v19  ;;  %244 = vperm.xlu0 %1297, %v215_v7  }
  0x97   :  { %v89_v32 = vadd.f32 %v88_v27, %v87_v20  ;;  %v117_v33 = vadd.f32 %v116_v28, %v115_v21 }
  0x98   :  { %v149_v35 = vsel %vm125_vm4, %v145_v29, 0.0 }
  0x99   :  { %v177_v36 = vsel %vm151_vm5, %v173_v30, %v149_v35  ;;  %v92_v37 = vsel %vm68_vm2, %v89_v32, 0.0 }
  0x9a   :  { %v120_v38 = vsel %vm94_vm3, %v117_v33, %v92_v37  ;;  %v181_v39 = vmul.f32 0.00390625, %v177_v36 }
  0x9b   :  { %v180_v41 = vmul.f32 0.00390625, %v120_v38  ;;  %249 = vperm.xlu2 %1296, %v216_v5  }
  0x9c   :  { %v185_v43 = vsub.f32 %v181_v39, %v183_v40 }
  0x9d   :  { %v184_v44 = vsub.f32 %v180_v41, %v182_v42 }
  0x9e   :  { %v189_v45 = vadd.f32 1e-05, %v185_v43 }
  0x9f   :  { %v188_v46 = vadd.f32 1e-05, %v184_v44 }
  0xa0   :  { %1381 = vrsqrt.f32 %v189_v45  ;;  %vm206_vm8 = vweird.f32 %v189_v45 }
  0xa1   :  { %1383 = vrsqrt.f32 %v188_v46  ;;  %vm196_vm9 = vweird.f32 %v188_v46 }
  0xa6   :  { %v1382_v47 = vpop.eup %1381 }
  0xa7   :  { %v1384_v48 = vpop.eup %1383  ;;  %v201_v24 = vmul.f32 %v1382_v47, %v189_v45  ;;  %vm207_vm6 = vweird.f32 %v1382_v47 }
  0xa8   :  { %v191_v49 = vmul.f32 %v1384_v48, %v188_v46  ;;  %vm197_vm7 = vweird.f32 %v1384_v48  ;;  %vm208_vm10 = vmor %vm206_vm8, %vm207_vm6 }
  0xa9   :  { %v202_v50 = vmul.f32 %v1382_v47, %v201_v24  ;;  %vm198_vm11 = vmor %vm196_vm9, %vm197_vm7 }
  0xaa   :  { %v192_v51 = vmul.f32 %v1384_v48, %v191_v49 }
  0xab   :  { %v203_v52 = vmul.f32 0.5, %v202_v50 }
  0xac   :  { %v193_v54 = vmul.f32 0.5, %v192_v51 }
  0xad   :  { %v204_v55 = vsub.f32 1.5, %v203_v52 }
  0xae   :  { %v194_v56 = vsub.f32 1.5, %v193_v54 }
  0xaf   :  { %v205_v57 = vmul.f32 %v1382_v47, %v204_v55 }
  0xb0   :  { %v195_v59 = vmul.f32 %v1384_v48, %v194_v56 }
  0xb1   :  { %v209_v61 = vsel %vm208_vm10, %v1382_v47, %v205_v57 }
  0xb2   :  { %v199_v62 = vsel %vm198_vm11, %v1384_v48, %v195_v59  ;;  %v211_v63 = vmul.f32 %v209_v61, %v187_v58 }
  0xb3   :  { %v210_v0 = vmul.f32 %v199_v62, %v186_v60 }
  0xb5   :  { %v226_v3 = vpack.c.bf16 %v211_v63, %v210_v0 }
  0xb7   :  { %289 = vmatpush.bf16.msra.mxu0 %v226_v3 }
  0xba   :  { %1230 = vmatmul.msk.bf16.vlgmr.msra.gmra.mxu0 %vm272_vm12, %v1270_v4 }
  0xca   :  { %1231 = vmatmul.msk.bf16.gmra.mxu0 %vm272_vm12, %v1271_v6 }
  0xda   :  { %1232 = vmatmul.msk.bf16.gmra.mxu0 %vm272_vm12, %v1272_v8 }
  0xed   :  { %v230_v17 = vpop.permute.xlu2 %229 }
  0xf5   :  { %v250_v23 = vpop.permute.xlu2 %249 }
 0x104   :  { %v235_v10 = vpop.permute.xlu1 %234 }
 0x108   :  { %v245_v18 = vpop.permute.xlu0 %244 }
 0x137   :  { %v291_v9 = vpop.f32.mrf.mxu0 }
 0x138   :  { %v292_v20 = vadd.f32 %v291_v9, %v230_v17 }
 0x13f   :  { %v293_v11 = vpop.f32.mrf.mxu0 }
 0x140   :  { %v294_v12 = vadd.f32 %v293_v11, %v235_v10 }
 0x142   :  { %v402_v13 = vpack.c.bf16 %v294_v12, %v294_v12 }
 0x144   :  { %v552_v15 = vsel %vm550_vm13, %v402_v13, 0 }
 0x145   :  { %561 = vmatpush.bf16.msra.mxu1 %v552_v15 }
 0x147   :  { %v1694_v16 = vpop.f32.mrf.mxu0 }
 0x14f   :  { %v298_v19 = vpop.f32.mrf.mxu0 }
 0x150   :  { %v299_v21 = vadd.f32 %v298_v19, %v245_v18 }
 0x152   :  { %v1299_v22 = vpack.i.bf16 %v299_v21, %v292_v20 }
 0x154   :  { %1300 = vxpose.xlu2.b32.start.end [1/1] (short) %v1299_v22, 128 }
 0x157   :  { %v301_v25 = vpop.f32.mrf.mxu0 }
 0x158   :  { %v302_v26 = vadd.f32 %v301_v25, %v250_v23 }
 0x15a   :  { %v403_v27 = vpack.c.bf16 %v302_v26, %v302_v26 }
 0x15c   :  { %v668_v28 = vsel %vm550_vm13, %v403_v27, 0 }
 0x15d   :  { %677 = vmatpush.bf16.msra.mxu2 %v668_v28 }
 0x1ed   :  { %v1301_v29 = vpop.trf.xlu2 }
 0x1ee   :  { %v1305_v30 = vunpack.i.h.bf16 %v1301_v29  ;;  %v1302_v31 = vunpack.i.l.bf16 %v1301_v29 }
 0x1f0   :  { %v386_v32 = vpack.c.bf16 %v1305_v30, %v1305_v30  ;;  %v370_v33 = vpack.c.bf16 %v1302_v31, %v1302_v31 }
 0x1f2   :  { %v501_v39 = vunpack.c.l.b16 %v370_v33  ;;  %v619_v41 = vunpack.c.l.b16 %v386_v32 }
 0x1f5   :  { %v1306_v34 = vpop.trf.xlu2 }
 0x1f6   :  { %v1310_v35 = vunpack.i.h.bf16 %v1306_v34  ;;  %v1307_v36 = vunpack.i.l.bf16 %v1306_v34 }
 0x1f8   :  { %v387_v37 = vpack.c.bf16 %v1310_v35, %v1310_v35  ;;  %v371_v38 = vpack.c.bf16 %v1307_v36, %v1307_v36 }
 0x1fa   :  { %v502_v40 = vunpack.c.l.b16 %v371_v38  ;;  %v620_v42 = vunpack.c.l.b16 %v387_v37 }
 0x1fc   :  { %v517_v43 = vpack.c.b16 %v502_v40, %v501_v39  ;;  %v635_v44 = vpack.c.b16 %v620_v42, %v619_v41 }
 0x1fd   :  { %v1311_v45 = vpop.trf.xlu2 }
 0x1fe   :  { %1249 = vmatmul.msk.bf16.vlgmr.msra.gmra.mxu1 %vm525_vm14, %v517_v43  ;;  %1257 = vmatmul.msk.bf16.vlgmr.msra.gmra.mxu2 %vm525_vm14, %v635_v44  ;;  %v1315_v46 = vunpack.i.h.bf16 %v1311_v45  ;;  %v1312_v47 = vunpack.i.l.bf16 %v1311_v45 }
 0x200   :  { %v388_v48 = vpack.c.bf16 %v1315_v46, %v1315_v46  ;;  %v372_v24 = vpack.c.bf16 %v1312_v47, %v1312_v47 }
 0x202   :  { %v503_v53 = vunpack.c.l.b16 %v372_v24  ;;  %v621_v55 = vunpack.c.l.b16 %v388_v48 }
 0x205   :  { %v1316_v49 = vpop.trf.xlu2 }
 0x206   :  { %v1320_v50 = vunpack.i.h.bf16 %v1316_v49  ;;  %v1317_v51 = vunpack.i.l.bf16 %v1316_v49 }
 0x208   :  { %v389_v14 = vpack.c.bf16 %v1320_v50, %v1320_v50  ;;  %v373_v52 = vpack.c.bf16 %v1317_v51, %v1317_v51 }
 0x20a   :  { %v504_v54 = vunpack.c.l.b16 %v373_v52  ;;  %v622_v56 = vunpack.c.l.b16 %v389_v14 }
 0x20c   :  { %v518_v57 = vpack.c.b16 %v504_v54, %v503_v53  ;;  %v636_v58 = vpack.c.b16 %v622_v56, %v621_v55 }
 0x20d   :  { %v1321_v59 = vpop.trf.xlu2 }
 0x20e   :  { %1250 = vmatmul.msk.bf16.gmra.mxu1 %vm525_vm14, %v518_v57  ;;  %1258 = vmatmul.msk.bf16.gmra.mxu2 %vm525_vm14, %v636_v58  ;;  %v1325_v60 = vunpack.i.h.bf16 %v1321_v59  ;;  %v1322_v61 = vunpack.i.l.bf16 %v1321_v59 }
 0x210   :  { %v390_v62 = vpack.c.bf16 %v1325_v60, %v1325_v60  ;;  %v374_v63 = vpack.c.bf16 %v1322_v61, %v1322_v61 }
 0x212   :  { %v505_v5 = vunpack.c.l.b16 %v374_v63  ;;  %v623_v8 = vunpack.c.l.b16 %v390_v62 }
 0x215   :  { %v1326_v0 = vpop.trf.xlu2 }
 0x216   :  { %v1330_v3 = vunpack.i.h.bf16 %v1326_v0  ;;  %v1327_v4 = vunpack.i.l.bf16 %v1326_v0 }
 0x218   :  { %v391_v7 = vpack.c.bf16 %v1330_v3, %v1330_v3  ;;  %v375_v1 = vpack.c.bf16 %v1327_v4, %v1327_v4 }
 0x21a   :  { %v506_v6 = vunpack.c.l.b16 %v375_v1  ;;  %v624_v9 = vunpack.c.l.b16 %v391_v7 }
 0x21c   :  { %v519_v10 = vpack.c.b16 %v506_v6, %v505_v5  ;;  %v637_v11 = vpack.c.b16 %v624_v9, %v623_v8 }
 0x21d   :  { %v1331_v12 = vpop.trf.xlu2 }
 0x21e   :  { %1251 = vmatmul.msk.bf16.gmra.mxu1 %vm525_vm14, %v519_v10  ;;  %1259 = vmatmul.msk.bf16.gmra.mxu2 %vm525_vm14, %v637_v11  ;;  %v1335_v13 = vunpack.i.h.bf16 %v1331_v12  ;;  %v1332_v15 = vunpack.i.l.bf16 %v1331_v12 }
 0x220   :  { %v392_v17 = vpack.c.bf16 %v1335_v13, %v1335_v13  ;;  %v376_v18 = vpack.c.bf16 %v1332_v15, %v1332_v15 }
 0x222   :  { %v507_v25 = vunpack.c.l.b16 %v376_v18  ;;  %v625_v27 = vunpack.c.l.b16 %v392_v17 }
 0x225   :  { %v1336_v19 = vpop.trf.xlu2 }
 0x226   :  { %v1340_v20 = vunpack.i.h.bf16 %v1336_v19  ;;  %v1337_v21 = vunpack.i.l.bf16 %v1336_v19 }
 0x228   :  { %v393_v22 = vpack.c.bf16 %v1340_v20, %v1340_v20  ;;  %v377_v23 = vpack.c.bf16 %v1337_v21, %v1337_v21 }
 0x22a   :  { %v508_v26 = vunpack.c.l.b16 %v377_v23  ;;  %v626_v28 = vunpack.c.l.b16 %v393_v22 }
 0x22c   :  { %v520_v29 = vpack.c.b16 %v508_v26, %v507_v25  ;;  %v638_v30 = vpack.c.b16 %v626_v28, %v625_v27 }
 0x22d   :  { %v1341_v31 = vpop.trf.xlu2 }
 0x22e   :  { %1252 = vmatmul.msk.bf16.gmra.mxu1 %vm525_vm14, %v520_v29  ;;  %1260 = vmatmul.msk.bf16.gmra.mxu2 %vm525_vm14, %v638_v30  ;;  %v1345_v32 = vunpack.i.h.bf16 %v1341_v31  ;;  %v1342_v33 = vunpack.i.l.bf16 %v1341_v31 }
 0x230   :  { %v394_v34 = vpack.c.bf16 %v1345_v32, %v1345_v32  ;;  %v378_v35 = vpack.c.bf16 %v1342_v33, %v1342_v33 }
 0x232   :  { %v509_v41 = vunpack.c.l.b16 %v378_v35  ;;  %v627_v43 = vunpack.c.l.b16 %v394_v34 }
 0x235   :  { %v1346_v36 = vpop.trf.xlu2 }
 0x236   :  { %v1350_v37 = vunpack.i.h.bf16 %v1346_v36  ;;  %v1347_v38 = vunpack.i.l.bf16 %v1346_v36  ;;  %v1542_v36 = vmov 0.0  }
 0x238   :  { %v395_v39 = vpack.c.bf16 %v1350_v37, %v1350_v37  ;;  %v379_v40 = vpack.c.bf16 %v1347_v38, %v1347_v38  ;;  %v1721_v37 = vsel %vm47_vm0, -1e+30, %v1542_v36 }
 0x23a   :  { %v510_v42 = vunpack.c.l.b16 %v379_v40  ;;  %v628_v44 = vunpack.c.l.b16 %v395_v39 }
 0x23c   :  { %v521_v45 = vpack.c.b16 %v510_v42, %v509_v41  ;;  %v639_v46 = vpack.c.b16 %v628_v44, %v627_v43 }
 0x23d   :  { %v1351_v47 = vpop.trf.xlu2 }
 0x23e   :  { %1253 = vmatmul.msk.bf16.gmra.mxu1 %vm525_vm14, %v521_v45  ;;  %1261 = vmatmul.msk.bf16.gmra.mxu2 %vm525_vm14, %v639_v46  ;;  %v1355_v48 = vunpack.i.h.bf16 %v1351_v47  ;;  %v1352_v24 = vunpack.i.l.bf16 %v1351_v47 }
 0x240   :  { %v396_v49 = vpack.c.bf16 %v1355_v48, %v1355_v48  ;;  %v380_v50 = vpack.c.bf16 %v1352_v24, %v1352_v24 }
 0x242   :  { %v511_v55 = vunpack.c.l.b16 %v380_v50  ;;  %v629_v57 = vunpack.c.l.b16 %v396_v49 }
 0x245   :  { %v1356_v51 = vpop.trf.xlu2 }
 0x246   :  { %v1360_v14 = vunpack.i.h.bf16 %v1356_v51  ;;  %v1357_v52 = vunpack.i.l.bf16 %v1356_v51 }
 0x248   :  { %v397_v53 = vpack.c.bf16 %v1360_v14, %v1360_v14  ;;  %v381_v54 = vpack.c.bf16 %v1357_v52, %v1357_v52 }
 0x24a   :  { %v512_v56 = vunpack.c.l.b16 %v381_v54  ;;  %v630_v58 = vunpack.c.l.b16 %v397_v53 }
 0x24c   :  { %v522_v59 = vpack.c.b16 %v512_v56, %v511_v55  ;;  %v640_v60 = vpack.c.b16 %v630_v58, %v629_v57 }
 0x24d   :  { %v1361_v61 = vpop.trf.xlu2 }
 0x24e   :  { %1254 = vmatmul.msk.bf16.gmra.mxu1 %vm525_vm14, %v522_v59  ;;  %1262 = vmatmul.msk.bf16.gmra.mxu2 %vm525_vm14, %v640_v60  ;;  %v1365_v62 = vunpack.i.h.bf16 %v1361_v61  ;;  %v1362_v63 = vunpack.i.l.bf16 %v1361_v61 }
 0x250   :  { %v398_v0 = vpack.c.bf16 %v1365_v62, %v1365_v62  ;;  %v382_v3 = vpack.c.bf16 %v1362_v63, %v1362_v63  ;;  %v1543_v62 = vmov -1e+30  }
 0x251   :  { %v1742_v63 = vsel %vm47_vm0, 0.0, %v1543_v62 }
 0x252   :  { %v513_v8 = vunpack.c.l.b16 %v382_v3  ;;  %v631_v10 = vunpack.c.l.b16 %v398_v0 }
 0x255   :  { %v1366_v4 = vpop.trf.xlu2 }
 0x256   :  { %v1370_v7 = vunpack.i.h.bf16 %v1366_v4  ;;  %v1367_v1 = vunpack.i.l.bf16 %v1366_v4 }
 0x258   :  { %v399_v5 = vpack.c.bf16 %v1370_v7, %v1370_v7  ;;  %v383_v6 = vpack.c.bf16 %v1367_v1, %v1367_v1 }
 0x25a   :  { %v514_v9 = vunpack.c.l.b16 %v383_v6  ;;  %v632_v11 = vunpack.c.l.b16 %v399_v5 }
 0x25c   :  { %v523_v12 = vpack.c.b16 %v514_v9, %v513_v8  ;;  %v641_v13 = vpack.c.b16 %v632_v11, %v631_v10 }
 0x25d   :  { %v1371_v15 = vpop.trf.xlu2 }
 0x25e   :  { %1255 = vmatmul.msk.bf16.gmra.mxu1 %vm525_vm14, %v523_v12  ;;  %1263 = vmatmul.msk.bf16.gmra.mxu2 %vm525_vm14, %v641_v13  ;;  %v1375_v17 = vunpack.i.h.bf16 %v1371_v15  ;;  %v1372_v18 = vunpack.i.l.bf16 %v1371_v15 }
 0x260   :  { %v400_v19 = vpack.c.bf16 %v1375_v17, %v1375_v17  ;;  %v384_v20 = vpack.c.bf16 %v1372_v18, %v1372_v18 }
 0x262   :  { %v515_v27 = vunpack.c.l.b16 %v384_v20  ;;  %v633_v29 = vunpack.c.l.b16 %v400_v19 }
 0x265   :  { %v1376_v21 = vpop.trf.xlu2 }
 0x266   :  { %v1380_v22 = vunpack.i.h.bf16 %v1376_v21  ;;  %v1377_v23 = vunpack.i.l.bf16 %v1376_v21 }
 0x268   :  { %v401_v25 = vpack.c.bf16 %v1380_v22, %v1380_v22  ;;  %v385_v26 = vpack.c.bf16 %v1377_v23, %v1377_v23 }
 0x26a   :  { %v516_v28 = vunpack.c.l.b16 %v385_v26  ;;  %v634_v30 = vunpack.c.l.b16 %v401_v25 }
 0x26c   :  { %v524_v31 = vpack.c.b16 %v516_v28, %v515_v27  ;;  %v642_v32 = vpack.c.b16 %v634_v30, %v633_v29 }
 0x26e   :  { %1256 = vmatmul.msk.bf16.gmra.mxu1 %vm525_vm14, %v524_v31  ;;  %1264 = vmatmul.msk.bf16.gmra.mxu2 %vm525_vm14, %v642_v32 }
 0x27b   :  { %v1713_v33 = vpop.f32.mrf.mxu1 }
 0x27c   :  { %v1850_v32 = vadd.f32 %v1721_v37, %v1713_v33 }
 0x281   :  { %v1715_v34 = vpop.f32.mrf.mxu2 }
 0x283   :  { %v1717_v35 = vpop.f32.mrf.mxu1 }
 0x289   :  { %v681_v38 = vpop.f32.mrf.mxu2 }
 0x28a   :  { %v1724_v39 = vadd.f32 %v1721_v37, %v681_v38  ;;  %v1860_v38 = vadd.f32 %v1721_v37, %v1715_v34 }
 0x28b   :  { %v1726_v40 = vpop.f32.mrf.mxu1 }
 0x28c   :  { %v1830_v28 = vadd.f32 %v1721_v37, %v1726_v40  ;;  %v1864_v40 = vadd.f32 %v1721_v37, %v1717_v35 }
 0x291   :  { %v1728_v41 = vpop.f32.mrf.mxu2 }
 0x292   :  { %v1840_v30 = vadd.f32 %v1721_v37, %v1728_v41 }
 0x293   :  { %v1730_v42 = vpop.f32.mrf.mxu1 }
 0x294   :  { %v1844_v31 = vadd.f32 %v1721_v37, %v1730_v42 }
 0x299   :  { %v1732_v43 = vpop.f32.mrf.mxu2 }
 0x29a   :  { %v1854_v36 = vadd.f32 %v1721_v37, %v1732_v43 }
 0x29b   :  { %v573_v44 = vpop.f32.mrf.mxu1 }
 0x29c   :  { %v1811_v23 = vadd.f32 %v1721_v37, %v573_v44 }
 0x2a1   :  { %v1734_v45 = vpop.f32.mrf.mxu2 }
 0x2a2   :  { %v1820_v26 = vadd.f32 %v1721_v37, %v1734_v45 }
 0x2a3   :  { %v1736_v46 = vpop.f32.mrf.mxu1 }
 0x2a4   :  { %v1824_v27 = vadd.f32 %v1721_v37, %v1736_v46 }
 0x2a9   :  { %v1738_v47 = vpop.f32.mrf.mxu2 }
 0x2aa   :  { %v1834_v29 = vadd.f32 %v1721_v37, %v1738_v47 }
 0x2ab   :  { %v578_v48 = vpop.f32.mrf.mxu1 }
 0x2ac   :  { %v579_v19 = vadd.f32 %v1721_v37, %v578_v48 }
 0x2b1   :  { %v694_v24 = vpop.f32.mrf.mxu2 }
 0x2b2   :  { %v1803_v21 = vadd.f32 %v1721_v37, %v694_v24 }
 0x2b3   :  { %v580_v49 = vpop.f32.mrf.mxu1 }
 0x2b4   :  { %v1806_v22 = vadd.f32 %v1721_v37, %v580_v49 }
 0x2b9   :  { %v696_v50 = vpop.f32.mrf.mxu2 }
 0x2ba   :  { %v1814_v25 = vadd.f32 %v1721_v37, %v696_v50 }
 0x2bb   :  { %v583_v51 = vpop.f32.mrf.mxu1 }
 0x2bc   :  { %v1785_v13 = vadd.f32 %v583_v51, %v1742_v63 }
 0x2c1   :  { %v699_v14 = vpop.f32.mrf.mxu2 }
 0x2c2   :  { %v1793_v17 = vadd.f32 %v699_v14, %v1742_v63 }
 0x2c3   :  { %v585_v52 = vpop.f32.mrf.mxu1 }
 0x2c4   :  { %v586_v18 = vadd.f32 %v585_v52, %v1742_v63 }
 0x2c9   :  { %v701_v53 = vpop.f32.mrf.mxu2 }
 0x2ca   :  { %v1799_v20 = vadd.f32 %v701_v53, %v1742_v63 }
 0x2cb   :  { %v588_v54 = vpop.f32.mrf.mxu1 }
 0x2cc   :  { %v1769_v9 = vadd.f32 %v588_v54, %v1742_v63 }
 0x2d1   :  { %v704_v55 = vpop.f32.mrf.mxu2 }
 0x2d2   :  { %v1777_v11 = vadd.f32 %v704_v55, %v1742_v63 }
 0x2d3   :  { %v590_v56 = vpop.f32.mrf.mxu1 }
 0x2d4   :  { %v1780_v12 = vadd.f32 %v590_v56, %v1742_v63 }
 0x2d9   :  { %v706_v57 = vpop.f32.mrf.mxu2 }
 0x2da   :  { %v1788_v15 = vadd.f32 %v706_v57, %v1742_v63 }
 0x2db   :  { %v593_v58 = vpop.f32.mrf.mxu1 }
 0x2dc   :  { %v1752_v5 = vadd.f32 %v593_v58, %v1742_v63 }
 0x2e1   :  { %v709_v59 = vpop.f32.mrf.mxu2 }
 0x2e2   :  { %v1761_v2 = vadd.f32 %v709_v59, %v1742_v63 }
 0x2e3   :  { %v595_v60 = vpop.f32.mrf.mxu1 }
 0x2e4   :  { %v1764_v8 = vadd.f32 %v595_v60, %v1742_v63 }
 0x2e9   :  { %v711_v61 = vpop.f32.mrf.mxu2 }
 0x2ea   :  { %v1772_v10 = vadd.f32 %v711_v61, %v1742_v63 }
 0x2eb   :  { %v598_v0 = vpop.f32.mrf.mxu1 }
 0x2ec   :  { %v1745_v3 = vadd.f32 %v598_v0, %v1742_v63 }
 0x2ee   :  { %747 = vmax.xlane.f32.xlu1 %v1745_v3 }
 0x2f1   :  { %v714_v4 = vpop.f32.mrf.mxu2 }
 0x2f2   :  { %v1749_v7 = vadd.f32 %v714_v4, %v1742_v63 }
 0x2f3   :  { %v600_v1 = vpop.f32.mrf.mxu1 }
 0x2f4   :  { %v1755_v6 = vadd.f32 %v600_v1, %v1742_v63  ;;  %779 = vmax.xlane.f32.xlu2 %v1749_v7 }
 0x2f6   :  { %749 = vmax.xlane.f32.xlu0 %v1755_v6  ;;  %743 = vmax.xlane.f32.xlu1 %v1752_v5 }
 0x2f9   :  { %v716_v33 = vpop.f32.mrf.mxu2 }
 0x2fa   :  { %v1871_v42 = vadd.f32 %v716_v33, %v1742_v63 }
 0x2fe   :  { %745 = vmax.xlane.f32.xlu0 %v1764_v8  ;;  %775 = vmax.xlane.f32.xlu1 %v1761_v2 }
 0x306   :  { %777 = vmax.xlane.f32.xlu0 %v1772_v10  ;;  %739 = vmax.xlane.f32.xlu1 %v1769_v9 }
 0x30e   :  { %741 = vmax.xlane.f32.xlu0 %v1780_v12  ;;  %771 = vmax.xlane.f32.xlu1 %v1777_v11 }
 0x316   :  { %773 = vmax.xlane.f32.xlu0 %v1788_v15  ;;  %735 = vmax.xlane.f32.xlu1 %v1785_v13 }
 0x31e   :  { %737 = vmax.xlane.f32.xlu0 %v586_v18  ;;  %767 = vmax.xlane.f32.xlu1 %v1793_v17 }
 0x326   :  { %769 = vmax.xlane.f32.xlu0 %v1799_v20  ;;  %731 = vmax.xlane.f32.xlu1 %v579_v19 }
 0x32e   :  { %733 = vmax.xlane.f32.xlu0 %v1806_v22  ;;  %763 = vmax.xlane.f32.xlu1 %v1803_v21 }
 0x336   :  { %765 = vmax.xlane.f32.xlu0 %v1814_v25  ;;  %727 = vmax.xlane.f32.xlu1 %v1811_v23 }
 0x33e   :  { %729 = vmax.xlane.f32.xlu0 %v1824_v27  ;;  %759 = vmax.xlane.f32.xlu1 %v1820_v26 }
 0x346   :  { %761 = vmax.xlane.f32.xlu0 %v1834_v29  ;;  %723 = vmax.xlane.f32.xlu1 %v1830_v28 }
 0x34e   :  { %725 = vmax.xlane.f32.xlu0 %v1844_v31  ;;  %755 = vmax.xlane.f32.xlu1 %v1840_v30 }
 0x356   :  { %757 = vmax.xlane.f32.xlu0 %v1854_v36  ;;  %719 = vmax.xlane.f32.xlu1 %v1850_v32 }
 0x35e   :  { %721 = vmax.xlane.f32.xlu0 %v1864_v40  ;;  %751 = vmax.xlane.f32.xlu1 %v1860_v38 }
 0x361   :  { %v1868_v41 = vpop.xlane.xlu1 %747 }
 0x366   :  { %753 = vmax.xlane.f32.xlu0 %v1724_v39  ;;  %781 = vmax.xlane.f32.xlu1 %v1871_v42 }
 0x369   :  { %v1875_v34 = vpop.xlane.xlu0 %749  ;;  %v1877_v43 = vpop.xlane.xlu1 %743 }
 0x371   :  { %v746_v35 = vpop.xlane.xlu0 %745  ;;  %v1879_v37 = vpop.xlane.xlu1 %775 }
 0x379   :  { %v1881_v44 = vpop.xlane.xlu0 %777  ;;  %v740_v45 = vpop.xlane.xlu1 %739 }
 0x381   :  { %v742_v46 = vpop.xlane.xlu0 %741  ;;  %v1883_v47 = vpop.xlane.xlu1 %771 }
 0x382   :  { %v794_v52 = vsub.f32 %v1780_v12, %v742_v46  ;;  %v796_v12 = vsub.f32 %v1764_v8, %v746_v35 }
 0x384   :  { %v837_v55 = vmul.f32 1.442695, %v794_v52 }
 0x389   :  { %v774_v48 = vpop.xlane.xlu0 %773  ;;  %v736_v24 = vpop.xlane.xlu1 %735 }
 0x38a   :  { %v791_v60 = vsub.f32 %v1785_v13, %v736_v24  ;;  %v793_v13 = vsub.f32 %v1769_v9, %v740_v45  ;;  %v810_v8 = vsub.f32 %v1788_v15, %v774_v48  ;;  %v798_v15 = vsub.f32 %v1755_v6, %v1875_v34 }
 0x38b   :  { %v812_v6 = vsub.f32 %v1772_v10, %v1881_v44  ;;  %v797_v10 = vsub.f32 %v1745_v3, %v1868_v41 }
 0x38c   :  { %v831_v0 = vmul.f32 1.442695, %v791_v60  ;;  %v835_v33 = vmul.f32 1.442695, %v793_v13 }
 0x391   :  { %v738_v49 = vpop.xlane.xlu0 %737  ;;  %v768_v50 = vpop.xlane.xlu1 %767 }
 0x392   :  { %v792_v51 = vsub.f32 %v586_v18, %v738_v49  ;;  %v807_v9 = vsub.f32 %v1793_v17, %v768_v50  ;;  %v869_v49 = vmul.f32 1.442695, %v810_v8  ;;  %v795_v17 = vsub.f32 %v1752_v5, %v1877_v43 }
 0x393   :  { %v809_v5 = vsub.f32 %v1777_v11, %v1883_v47 }
 0x394   :  { %v833_v14 = vmul.f32 1.442695, %v792_v51  ;;  %v863_v51 = vmul.f32 1.442695, %v807_v9 }
 0x396   :  { %1385 = vpow2.f32 %v833_v14 }
 0x397   :  { %1387 = vpow2.f32 %v837_v55 }
 0x399   :  { %v770_v53 = vpop.xlane.xlu0 %769  ;;  %v732_v54 = vpop.xlane.xlu1 %731 }
 0x39a   :  { %v789_v56 = vsub.f32 %v579_v19, %v732_v54  ;;  %v808_v59 = vsub.f32 %v1799_v20, %v770_v53  ;;  %v841_v20 = vmul.f32 1.442695, %v796_v12  ;;  %v845_v53 = vmul.f32 1.442695, %v798_v15 }
 0x39b   :  { %v839_v54 = vmul.f32 1.442695, %v795_v17 }
 0x39c   :  { %v1886_v57 = vpop.eup %1385  ;;  %v827_v58 = vmul.f32 1.442695, %v789_v56  ;;  %v865_v63 = vmul.f32 1.442695, %v808_v59  ;;  %v867_v59 = vmul.f32 1.442695, %v809_v5 }
 0x39d   :  { %897 = vadd.xlane.f32.xlu0 %v1886_v57  ;;  %v1895_v4 = vpop.eup %1387 }
 0x39e   :  { %1389 = vpow2.f32 %v827_v58  ;;  %v873_v58 = vmul.f32 1.442695, %v812_v6 }
 0x39f   :  { %1391 = vpow2.f32 %v865_v63 }
 0x3a0   :  { %1393 = vpow2.f32 %v831_v0  ;;  %v843_v0 = vmul.f32 1.442695, %v797_v10 }
 0x3a1   :  { %v1891_v61 = vpop.xlane.xlu0 %733  ;;  %v1893_v62 = vpop.xlane.xlu1 %763  ;;  %1395 = vpow2.f32 %v841_v20 }
 0x3a2   :  { %1397 = vpow2.f32 %v835_v33  ;;  %v811_v33 = vsub.f32 %v1761_v2, %v1879_v37  ;;  %v790_v6 = vsub.f32 %v1806_v22, %v1891_v61 }
 0x3a3   :  { %1399 = vpow2.f32 %v869_v49 }
 0x3a4   :  { %v1897_v1 = vpop.eup %1389  ;;  %1401 = vpow2.f32 %v863_v51  ;;  %v871_v41 = vmul.f32 1.442695, %v811_v33  ;;  %v829_v5 = vmul.f32 1.442695, %v790_v6 }
 0x3a5   :  { %901 = vadd.xlane.f32.xlu0 %v1895_v4  ;;  %891 = vadd.xlane.f32.xlu1 %v1897_v1  ;;  %v1907_v46 = vpop.eup %1391  ;;  %1403 = vpow2.f32 %v845_v53 }
 0x3a6   :  { %v1909_v24 = vpop.eup %1393  ;;  %1405 = vpow2.f32 %v839_v54 }
 0x3a7   :  { %v1919_v14 = vpop.eup %1395  ;;  %1407 = vpow2.f32 %v873_v58 }
 0x3a8   :  { %v1921_v52 = vpop.eup %1397  ;;  %1409 = vpow2.f32 %v867_v59 }
 0x3a9   :  { %v1903_v18 = vpop.xlane.xlu0 %765  ;;  %v1905_v19 = vpop.xlane.xlu1 %727 }
 0x3aa   :  { %v1933_v55 = vpop.eup %1399  ;;  %v787_v22 = vsub.f32 %v1811_v23, %v1905_v19  ;;  %v806_v61 = vsub.f32 %v1814_v25, %v1903_v18  ;;  %v217_v25 = vld [vmem:[%s2135_s3 + $0x28] sm:$0xff] }
 0x3ab   :  { %v1935_v56 = vpop.eup %1401 }
 0x3ac   :  { %v1947_v60 = vpop.eup %1403  ;;  %v861_v10 = vmul.f32 1.442695, %v806_v61 }
 0x3ad   :  { %929 = vadd.xlane.f32.xlu0 %v1907_v46  ;;  %895 = vadd.xlane.f32.xlu1 %v1909_v24  ;;  %v1949_v63 = vpop.eup %1405 }
 0x3ae   :  { %v1958_v12 = vpop.eup %1407 }
 0x3af   :  { %v1960_v20 = vpop.eup %1409 }
 0x3b1   :  { %v1915_v35 = vpop.xlane.xlu0 %729  ;;  %v1917_v45 = vpop.xlane.xlu1 %759 }
 0x3b2   :  { %v788_v23 = vsub.f32 %v1824_v27, %v1915_v35 }
 0x3b4   :  { %v825_v18 = vmul.f32 1.442695, %v788_v23 }
 0x3b5   :  { %905 = vadd.xlane.f32.xlu0 %v1919_v14  ;;  %899 = vadd.xlane.f32.xlu1 %v1921_v52 }
 0x3b9   :  { %v1929_v48 = vpop.xlane.xlu0 %761  ;;  %v1931_v50 = vpop.xlane.xlu1 %723 }
 0x3ba   :  { %v804_v27 = vsub.f32 %v1834_v29, %v1929_v48 }
 0x3bd   :  { %933 = vadd.xlane.f32.xlu0 %v1933_v55  ;;  %927 = vadd.xlane.f32.xlu1 %v1935_v56 }
 0x3c1   :  { %v1943_v34 = vpop.xlane.xlu0 %725  ;;  %v1945_v43 = vpop.xlane.xlu1 %755 }
 0x3c5   :  { %909 = vadd.xlane.f32.xlu0 %v1947_v60  ;;  %903 = vadd.xlane.f32.xlu1 %v1949_v63 }
 0x3c9   :  { %v758_v11 = vpop.xlane.xlu0 %757  ;;  %v1955_v44 = vpop.xlane.xlu1 %719 }
 0x3ca   :  { %v802_v47 = vsub.f32 %v1854_v36, %v758_v11  ;;  %v780_v36 = vpop.xlane.xlu2 %779 }
 0x3cb   :  { %v813_v15 = vsub.f32 %v1749_v7, %v780_v36  ;;  %v805_v7 = vsub.f32 %v1803_v21, %v1893_v62  ;;  %v823_v21 = vmul.f32 1.442695, %v787_v22 }
 0x3cc   :  { %v853_v13 = vmul.f32 1.442695, %v802_v47  ;;  %v803_v47 = vsub.f32 %v1820_v26, %v1917_v45  ;;  %v785_v26 = vsub.f32 %v1830_v28, %v1931_v50  ;;  %v857_v45 = vmul.f32 1.442695, %v804_v27 }
 0x3cd   :  { %937 = vadd.xlane.f32.xlu0 %v1958_v12  ;;  %931 = vadd.xlane.f32.xlu1 %v1960_v20  ;;  %v875_v37 = vmul.f32 1.442695, %v813_v15  ;;  %v859_v58 = vmul.f32 1.442695, %v805_v7  ;;  %v786_v28 = vsub.f32 %v1844_v31, %v1943_v34 }
 0x3ce   :  { %1411 = vpow2.f32 %v853_v13  ;;  %v855_v19 = vmul.f32 1.442695, %v803_v47  ;;  %v819_v35 = vmul.f32 1.442695, %v785_v26 }
 0x3cf   :  { %1413 = vpow2.f32 %v843_v0  ;;  %v821_v48 = vmul.f32 1.442695, %v786_v28 }
 0x3d0   :  { %1415 = vpow2.f32 %v871_v41 }
 0x3d1   :  { %v752_v3 = vpop.xlane.xlu1 %751  ;;  %v722_v41 = vpop.xlane.xlu0 %721 }
 0x3d2   :  { %v799_v8 = vsub.f32 %v1860_v38, %v752_v3 }
 0x3d4   :  { %v1967_v9 = vpop.eup %1411  ;;  %v847_v49 = vmul.f32 1.442695, %v799_v8  ;;  %v801_v8 = vsub.f32 %v1840_v30, %v1945_v43  ;;  %v783_v30 = vsub.f32 %v1850_v32, %v1955_v44 }
 0x3d5   :  { %v1969_v51 = vpop.eup %1413  ;;  %917 = vadd.xlane.f32.xlu2 %v1967_v9 }
 0x3d6   :  { %907 = vadd.xlane.f32.xlu1 %v1969_v51  ;;  %1417 = vpow2.f32 %v847_v49  ;;  %v1975_v53 = vpop.eup %1415  ;;  %v851_v29 = vmul.f32 1.442695, %v801_v8  ;;  %v784_v49 = vsub.f32 %v1864_v40, %v722_v41  ;;  %v815_v31 = vmul.f32 1.442695, %v783_v30 }
 0x3d7   :  { %1419 = vpow2.f32 %v875_v37 }
 0x3d8   :  { %v817_v15 = vmul.f32 1.442695, %v784_v49 }
 0x3d9   :  { %v782_v2 = vpop.xlane.xlu1 %781  ;;  %v754_v43 = vpop.xlane.xlu0 %753 }
 0x3da   :  { %v814_v17 = vsub.f32 %v1871_v42, %v782_v2  ;;  %v800_v40 = vsub.f32 %v1724_v39, %v754_v43 }
 0x3dc   :  { %v877_v38 = vmul.f32 1.442695, %v814_v17  ;;  %v1977_v54 = vpop.eup %1417  ;;  %v849_v17 = vmul.f32 1.442695, %v800_v40 }
 0x3dd   :  { %911 = vadd.xlane.f32.xlu2 %v1977_v54  ;;  %v1985_v42 = vpop.eup %1419 }
 0x3de   :  { %935 = vadd.xlane.f32.xlu1 %v1975_v53  ;;  %1421 = vpow2.f32 %v877_v38 }
 0x3df   :  { %1423 = vpow2.f32 %v829_v5 }
 0x3e0   :  { %1425 = vpow2.f32 %v859_v58 }
 0x3e1   :  { %1427 = vpow2.f32 %v823_v21 }
 0x3e2   :  { %1429 = vpow2.f32 %v861_v10 }
 0x3e3   :  { %1431 = vpow2.f32 %v855_v19  ;;  %v214_v19 = vld [vmem:[%s2135_s3 + $0x10] sm:$0xff] }
 0x3e4   :  { %v1987_v59 = vpop.eup %1421  ;;  %1433 = vpow2.f32 %v825_v18 }
 0x3e5   :  { %941 = vadd.xlane.f32.xlu0 %v1987_v59  ;;  %v1995_v62 = vpop.eup %1423  ;;  %1435 = vpow2.f32 %v819_v35 }
 0x3e6   :  { %939 = vadd.xlane.f32.xlu1 %v1985_v42  ;;  %v1997_v11 = vpop.eup %1425  ;;  %1437 = vpow2.f32 %v857_v45  ;;  %v219_v45 = vld [vmem:[%s2135_s3 + $0x38] sm:$0xff] }
 0x3e7   :  { %v2008_v0 = vpop.eup %1427  ;;  %1439 = vpow2.f32 %v851_v29 }
 0x3e8   :  { %v2010_v13 = vpop.eup %1429  ;;  %1441 = vpow2.f32 %v821_v48 }
 0x3e9   :  { %v2018_v33 = vpop.eup %1431  ;;  %1443 = vpow2.f32 %v817_v15 }
 0x3ea   :  { %v2020_v3 = vpop.eup %1433  ;;  %1445 = vpow2.f32 %v815_v31 }
 0x3eb   :  { %v2028_v50 = vpop.eup %1435  ;;  %1447 = vpow2.f32 %v849_v17 }
 0x3ec   :  { %v2030_v36 = vpop.eup %1437 }
 0x3ed   :  { %893 = vadd.xlane.f32.xlu0 %v1995_v62  ;;  %v2037_v34 = vpop.eup %1439 }
 0x3ee   :  { %923 = vadd.xlane.f32.xlu1 %v1997_v11  ;;  %v2039_v2 = vpop.eup %1441 }
 0x3ef   :  { %v2044_v38 = vpop.eup %1443 }
 0x3f0   :  { %v2046_v32 = vpop.eup %1445 }
 0x3f1   :  { %v2052_v7 = vpop.eup %1447 }
 0x3f5   :  { %254 = vperm.xlu2 %1296, %v217_v25   ;;  %925 = vadd.xlane.f32.xlu0 %v2010_v13 }
 0x3f6   :  { %887 = vadd.xlane.f32.xlu1 %v2008_v0 }
 0x3fd   :  { %889 = vadd.xlane.f32.xlu0 %v2020_v3 }
 0x3fe   :  { %919 = vadd.xlane.f32.xlu1 %v2018_v33 }
 0x405   :  { %921 = vadd.xlane.f32.xlu0 %v2030_v36 }
 0x406   :  { %883 = vadd.xlane.f32.xlu1 %v2028_v50 }
 0x40d   :  { %885 = vadd.xlane.f32.xlu0 %v2039_v2 }
 0x40e   :  { %915 = vadd.xlane.f32.xlu1 %v2037_v34 }
 0x410   :  { %v898_v37 = vpop.xlane.xlu0 %897 }
 0x411   :  { %1449 = vrcp.f32 %v898_v37 }
 0x415   :  { %879 = vadd.xlane.f32.xlu0 %v2046_v32 }
 0x416   :  { %881 = vadd.xlane.f32.xlu1 %v2044_v38 }
 0x417   :  { %v1450_v5 = vpop.eup %1449 }
 0x418   :  { %v902_v44 = vpop.xlane.xlu0 %901  ;;  %v2050_v6 = vpop.xlane.xlu1 %891  ;;  %v984_v22 = vmul.f32 %v1450_v5, %v1886_v57 }
 0x41a   :  { %v1016_v47 = vpack.c.bf16 %v984_v22, %v984_v22 }
 0x41c   :  { %v2062_v26 = vunpack.c.l.b16 %v1016_v47 }
 0x41d   :  { %913 = vadd.xlane.f32.xlu0 %v2052_v7 }
 0x420   :  { %v896_v39 = vpop.xlane.xlu1 %895  ;;  %v930_v58 = vpop.xlane.xlu0 %929 }
 0x421   :  { %1451 = vrcp.f32 %v896_v39 }
 0x422   :  { %1453 = vrcp.f32 %v930_v58 }
 0x427   :  { %v1452_v61 = vpop.eup %1451 }
 0x428   :  { %v900_v21 = vpop.xlane.xlu1 %899  ;;  %v983_v10 = vmul.f32 %v1452_v61, %v1909_v24  ;;  %v906_v25 = vpop.xlane.xlu0 %905  ;;  %v218_v24 = vld [vmem:[%s2135_s3 + $0x30] sm:$0xff] }
 0x429   :  { %v1454_v35 = vpop.eup %1453 }
 0x42a   :  { %v1015_v23 = vpack.c.bf16 %v983_v10, %v983_v10  ;;  %v1000_v41 = vmul.f32 %v1454_v35, %v1907_v46 }
 0x42c   :  { %v2060_v18 = vunpack.c.l.b16 %v1015_v23  ;;  %v1032_v49 = vpack.c.bf16 %v1000_v41, %v1000_v41 }
 0x42e   :  { %v1075_v57 = vpack.c.b16 %v2062_v26, %v2060_v18  ;;  %v2078_v15 = vunpack.c.l.b16 %v1032_v49 }
 0x42f   :  { %239 = vperm.xlu1 %1298, %v214_v19  }
 0x430   :  { %v928_v27 = vpop.xlane.xlu1 %927  ;;  %v2073_v8 = vpop.xlane.xlu0 %933 }
 0x431   :  { %1455 = vrcp.f32 %v928_v27  ;;  %1166 = vperm.xlu0 %1297, %v218_v24  }
 0x437   :  { %1171 = vperm.xlu1 %1298, %v219_v45   ;;  %v1456_v28 = vpop.eup %1455 }
 0x438   :  { %v904_v29 = vpop.xlane.xlu1 %903  ;;  %v999_v48 = vmul.f32 %v1456_v28, %v1935_v56  ;;  %v910_v40 = vpop.xlane.xlu0 %909 }
 0x439   :  { %1457 = vrcp.f32 %v910_v40 }
 0x43a   :  { %v1031_v30 = vpack.c.bf16 %v999_v48, %v999_v48  ;;  %1459 = vrcp.f32 %v904_v29 }
 0x43c   :  { %v2076_v43 = vunpack.c.l.b16 %v1031_v30 }
 0x43e   :  { %v1136_v31 = vpack.c.b16 %v2078_v15, %v2076_v43 }
 0x43f   :  { %v1458_v17 = vpop.eup %1457 }
 0x440   :  { %v932_v37 = vpop.xlane.xlu1 %931  ;;  %v990_v39 = vmul.f32 %v1458_v17, %v1947_v60  ;;  %v1460_v56 = vpop.eup %1459 }
 0x441   :  { %v938_v58 = vpop.xlane.xlu0 %937  ;;  %v987_v19 = vmul.f32 %v1460_v56, %v1949_v63 }
 0x442   :  { %v1022_v10 = vpack.c.bf16 %v990_v39, %v990_v39 }
 0x443   :  { %v1019_v45 = vpack.c.bf16 %v987_v19, %v987_v19 }
 0x444   :  { %v1070_v27 = vunpack.c.l.b16 %v1022_v10 }
 0x449   :  { %v908_v46 = vpop.xlane.xlu1 %907 }
 0x44a   :  { %1461 = vrcp.f32 %v908_v46 }
 0x44b   :  { %1463 = vrcp.f32 %v906_v25 }
 0x44c   :  { %1465 = vrcp.f32 %v900_v21  ;;  %v1067_v21 = vunpack.c.l.b16 %v1019_v45 }
 0x44d   :  { %1467 = vrcp.f32 %v902_v44 }
 0x450   :  { %v1462_v5 = vpop.eup %1461 }
 0x451   :  { %v936_v22 = vpop.xlane.xlu1 %935  ;;  %v989_v61 = vmul.f32 %v1462_v5, %v1969_v51  ;;  %v1464_v47 = vpop.eup %1463 }
 0x452   :  { %v988_v35 = vmul.f32 %v1464_v47, %v1919_v14  ;;  %v1466_v60 = vpop.eup %1465  ;;  %1469 = vrcp.f32 %v936_v22 }
 0x453   :  { %v1021_v23 = vpack.c.bf16 %v989_v61, %v989_v61  ;;  %v1468_v29 = vpop.eup %1467  ;;  %v985_v48 = vmul.f32 %v1466_v60, %v1921_v52 }
 0x454   :  { %v1020_v28 = vpack.c.bf16 %v988_v35, %v988_v35  ;;  %v986_v44 = vmul.f32 %v1468_v29, %v1895_v4 }
 0x455   :  { %v1069_v24 = vunpack.c.l.b16 %v1021_v23  ;;  %v1017_v30 = vpack.c.bf16 %v985_v48, %v985_v48 }
 0x456   :  { %v1068_v63 = vunpack.c.l.b16 %v1020_v28  ;;  %v1018_v39 = vpack.c.bf16 %v986_v44, %v986_v44 }
 0x457   :  { %v1078_v25 = vpack.c.b16 %v1070_v27, %v1069_v24  ;;  %v1065_v52 = vunpack.c.l.b16 %v1017_v30 }
 0x458   :  { %v942_v41 = vpop.xlane.xlu0 %941  ;;  %v1470_v49 = vpop.eup %1469  ;;  %v1077_v14 = vpack.c.b16 %v1068_v63, %v1067_v21  ;;  %v1066_v47 = vunpack.c.l.b16 %v1018_v39 }
 0x459   :  { %1087 = vmatpush.bf16.xpose.msra.mxu3 %v1078_v25  ;;  %1471 = vrcp.f32 %v942_v41  ;;  %v940_v51 = vpop.xlane.xlu1 %939  ;;  %v1003_v10 = vmul.f32 %v1470_v49, %v1975_v53 }
 0x45a   :  { %1473 = vrcp.f32 %v940_v51  ;;  %v1076_v24 = vpack.c.b16 %v1066_v47, %v1065_v52  ;;  %v918_v47 = vpop.xlane.xlu2 %917 }
 0x45b   :  { %1475 = vrcp.f32 %v938_v58 }
 0x45f   :  { %v1472_v40 = vpop.eup %1471 }
 0x460   :  { %v1474_v46 = vpop.eup %1473  ;;  %v894_v17 = vpop.xlane.xlu0 %893  ;;  %v1006_v56 = vmul.f32 %v1472_v40, %v1987_v59 }
 0x461   :  { %1088 = vmatpush.bf16.xpose.msra.mxu3 %v1077_v14  ;;  %1477 = vrcp.f32 %v894_v17  ;;  %v924_v5 = vpop.xlane.xlu1 %923  ;;  %v1005_v22 = vmul.f32 %v1474_v46, %v1985_v42  ;;  %v1476_v61 = vpop.eup %1475  ;;  %v1035_v42 = vpack.c.bf16 %v1003_v10, %v1003_v10 }
 0x462   :  { %1479 = vrcp.f32 %v932_v37  ;;  %v1038_v58 = vpack.c.bf16 %v1006_v56, %v1006_v56  ;;  %v1004_v59 = vmul.f32 %v1476_v61, %v1958_v12 }
 0x463   :  { %1481 = vrcp.f32 %v2050_v6  ;;  %v1037_v4 = vpack.c.bf16 %v1005_v22, %v1005_v22 }
 0x464   :  { %1483 = vrcp.f32 %v2073_v8  ;;  %v1131_v23 = vunpack.c.l.b16 %v1038_v58  ;;  %v1036_v60 = vpack.c.bf16 %v1004_v59, %v1004_v59  ;;  %v1128_v8 = vunpack.c.l.b16 %v1035_v42 }
 0x465   :  { %v1130_v19 = vunpack.c.l.b16 %v1037_v4 }
 0x466   :  { %v1129_v29 = vunpack.c.l.b16 %v1036_v60 }
 0x467   :  { %v1478_v27 = vpop.eup %1477  ;;  %v1139_v35 = vpack.c.b16 %v1131_v23, %v1130_v19 }
 0x468   :  { %v1480_v25 = vpop.eup %1479  ;;  %v926_v45 = vpop.xlane.xlu0 %925  ;;  %v982_v53 = vmul.f32 %v1478_v27, %v1995_v62  ;;  %v1138_v48 = vpack.c.b16 %v1129_v29, %v1128_v8 }
 0x469   :  { %1089 = vmatpush.bf16.xpose.msra.mxu3 %v1076_v24  ;;  %v1482_v37 = vpop.eup %1481  ;;  %1148 = vmatpush.bf16.xpose.msrb.mxu0 %v1139_v35  ;;  %v888_v6 = vpop.xlane.xlu1 %887  ;;  %v1001_v28 = vmul.f32 %v1480_v25, %v1960_v20 }
 0x46a   :  { %v1484_v41 = vpop.eup %1483  ;;  %1485 = vrcp.f32 %v888_v6  ;;  %v981_v12 = vmul.f32 %v1482_v37, %v1897_v1  ;;  %v1014_v21 = vpack.c.bf16 %v982_v53, %v982_v53  ;;  %v912_v53 = vpop.xlane.xlu2 %911 }
 0x46b   :  { %v1002_v51 = vmul.f32 %v1484_v41, %v1933_v55  ;;  %v1033_v63 = vpack.c.bf16 %v1001_v28, %v1001_v28  ;;  %1487 = vrcp.f32 %v926_v45 }
 0x46c   :  { %v1013_v44 = vpack.c.bf16 %v981_v12, %v981_v12  ;;  %v1062_v30 = vunpack.c.l.b16 %v1014_v21 }
 0x46d   :  { %v1034_v14 = vpack.c.bf16 %v1002_v51, %v1002_v51  ;;  %v1126_v1 = vunpack.c.l.b16 %v1033_v63 }
 0x46e   :  { %v1061_v40 = vunpack.c.l.b16 %v1013_v44 }
 0x46f   :  { %v1127_v55 = vunpack.c.l.b16 %v1034_v14 }
 0x470   :  { %v890_v49 = vpop.xlane.xlu0 %889  ;;  %v1486_v20 = vpop.eup %1485  ;;  %v1074_v17 = vpack.c.b16 %v1062_v30, %v1061_v40 }
 0x471   :  { %1090 = vmatpush.bf16.xpose.msra.mxu3 %v1075_v57  ;;  %1149 = vmatpush.bf16.xpose.msrb.mxu0 %v1138_v48  ;;  %v920_v62 = vpop.xlane.xlu1 %919  ;;  %1489 = vrcp.f32 %v890_v49  ;;  %v979_v46 = vmul.f32 %v1486_v20, %v2008_v0  ;;  %v1488_v39 = vpop.eup %1487  ;;  %v1137_v56 = vpack.c.b16 %v1127_v55, %v1126_v1 }
 0x472   :  { %1491 = vrcp.f32 %v924_v5  ;;  %v998_v5 = vmul.f32 %v1488_v39, %v2010_v13 }
 0x473   :  { %v1011_v61 = vpack.c.bf16 %v979_v46, %v979_v46 }
 0x474   :  { %v1030_v19 = vpack.c.bf16 %v998_v5, %v998_v5 }
 0x475   :  { %v1059_v4 = vunpack.c.l.b16 %v1011_v61 }
 0x476   :  { %v1123_v13 = vunpack.c.l.b16 %v1030_v19 }
 0x477   :  { %v1490_v18 = vpop.eup %1489 }
 0x478   :  { %v922_v26 = vpop.xlane.xlu0 %921  ;;  %v980_v22 = vmul.f32 %v1490_v18, %v2020_v3  ;;  %v1492_v52 = vpop.eup %1491 }
 0x479   :  { %1091 = vmatpush.bf16.xpose.msra.mxu3 %v1074_v17  ;;  %1150 = vmatpush.bf16.xpose.msrb.mxu0 %v1137_v56  ;;  %v884_v57 = vpop.xlane.xlu1 %883  ;;  %1493 = vrcp.f32 %v922_v26  ;;  %v997_v10 = vmul.f32 %v1492_v52, %v1997_v11 }
 0x47a   :  { %1495 = vrcp.f32 %v920_v62  ;;  %v1012_v58 = vpack.c.bf16 %v980_v22, %v980_v22 }
 0x47b   :  { %1497 = vrcp.f32 %v884_v57  ;;  %v1029_v35 = vpack.c.bf16 %v997_v10, %v997_v10  ;;  %v303_v10 = vpop.f32.mrf.mxu0 }
 0x47c   :  { %v1060_v0 = vunpack.c.l.b16 %v1012_v58 }
 0x47d   :  { %v1122_v11 = vunpack.c.l.b16 %v1029_v35 }
 0x47e   :  { %v1073_v23 = vpack.c.b16 %v1060_v0, %v1059_v4 }
 0x47f   :  { %v1494_v59 = vpop.eup %1493  ;;  %v1135_v6 = vpack.c.b16 %v1123_v13, %v1122_v11 }
 0x480   :  { %v1496_v24 = vpop.eup %1495  ;;  %v886_v27 = vpop.xlane.xlu0 %885  ;;  %v996_v25 = vmul.f32 %v1494_v59, %v2030_v36 }
 0x481   :  { %1092 = vmatpush.bf16.xpose.msra.mxu3 %v1073_v23  ;;  %1151 = vmatpush.bf16.xpose.msrb.mxu0 %v1136_v31  ;;  %v916_v3 = vpop.xlane.xlu1 %915  ;;  %v1498_v42 = vpop.eup %1497  ;;  %1499 = vrcp.f32 %v886_v27  ;;  %v995_v45 = vmul.f32 %v1496_v24, %v2018_v33  ;;  %v1289_v27 = vld [vmem:[%s2134_s2] sm:$0xff]  ;;  %s1206_s2 = sshll.u32 %s2136_s4, 4  ;;  %s1207_s2 = int_to_ptr.hbm [resolvable:$true] %s1206_s2 }
 0x482   :  { %1501 = vrcp.f32 %v916_v3  ;;  %v977_v37 = vmul.f32 %v1498_v42, %v2028_v50  ;;  %v1028_v60 = vpack.c.bf16 %v996_v25, %v996_v25  ;;  %v1513_v25 = vld [vmem:[%s2132_s0] sm:$0xff] }
 0x483   :  { %1503 = vrcp.f32 %v918_v47  ;;  %v1027_v12 = vpack.c.bf16 %v995_v45, %v995_v45 }
 0x484   :  { %v1009_v28 = vpack.c.bf16 %v977_v37, %v977_v37  ;;  %v1121_v51 = vunpack.c.l.b16 %v1028_v60  ;;  %v1514_v60 = vld [vmem:[%s2132_s0 + $0x8] sm:$0xff] }
 0x485   :  { %v1120_v48 = vunpack.c.l.b16 %v1027_v12 }
 0x486   :  { %v1057_v33 = vunpack.c.l.b16 %v1009_v28 }
 0x487   :  { %v1500_v41 = vpop.eup %1499  ;;  %v1134_v49 = vpack.c.b16 %v1121_v51, %v1120_v48 }
 0x488   :  { %v1502_v43 = vpop.eup %1501  ;;  %v880_v15 = vpop.xlane.xlu0 %879  ;;  %v978_v8 = vmul.f32 %v1500_v41, %v2039_v2 }
 0x489   :  { %1152 = vmatpush.bf16.xpose.msrb.mxu0 %v1135_v6  ;;  %v882_v31 = vpop.xlane.xlu1 %881  ;;  %v1504_v29 = vpop.eup %1503  ;;  %1505 = vrcp.f32 %v880_v15  ;;  %v993_v50 = vmul.f32 %v1502_v43, %v2037_v34 }
 0x48a   :  { %1507 = vrcp.f32 %v882_v31  ;;  %v1010_v36 = vpack.c.bf16 %v978_v8, %v978_v8  ;;  %v994_v63 = vmul.f32 %v1504_v29, %v1967_v9 }
 0x48b   :  { %1509 = vrcp.f32 %v912_v53  ;;  %v1025_v62 = vpack.c.bf16 %v993_v50, %v993_v50 }
 0x48c   :  { %v1058_v21 = vunpack.c.l.b16 %v1010_v36  ;;  %v1026_v1 = vpack.c.bf16 %v994_v63, %v994_v63 }
 0x48d   :  { %v1118_v46 = vunpack.c.l.b16 %v1025_v62 }
 0x48e   :  { %v1072_v44 = vpack.c.b16 %v1058_v21, %v1057_v33  ;;  %v1119_v9 = vunpack.c.l.b16 %v1026_v1 }
 0x48f   :  { %v1506_v14 = vpop.eup %1505 }
 0x490   :  { %v1508_v2 = vpop.eup %1507  ;;  %v914_v20 = vpop.xlane.xlu0 %913  ;;  %1093 = vmatpush.bf16.xpose.msra.mxu3 %v1072_v44  ;;  %v975_v30 = vmul.f32 %v1506_v14, %v2046_v32  ;;  %v1133_v26 = vpack.c.b16 %v1119_v9, %v1118_v46 }
 0x491   :  { %1153 = vmatpush.bf16.xpose.msrb.mxu0 %v1134_v49  ;;  %v1510_v40 = vpop.eup %1509  ;;  %1511 = vrcp.f32 %v914_v20  ;;  %v976_v34 = vmul.f32 %v1508_v2, %v2044_v38  ;;  %v255_v38 = vpop.permute.xlu2 %254 }
 0x492   :  { %v1007_v55 = vpack.c.bf16 %v975_v30, %v975_v30  ;;  %v991_v56 = vmul.f32 %v1510_v40, %v1977_v54  ;;  %v304_v54 = vadd.f32 %v303_v10, %v255_v38 }
 0x493   :  { %v1008_v17 = vpack.c.bf16 %v976_v34, %v976_v34 }
 0x494   :  { %v1055_v39 = vunpack.c.l.b16 %v1007_v55  ;;  %v1023_v32 = vpack.c.bf16 %v991_v56, %v991_v56  ;;  %v405_v19 = vpack.c.bf16 %v304_v54, %v304_v54 }
 0x495   :  { %v1056_v18 = vunpack.c.l.b16 %v1008_v17 }
 0x496   :  { %v1116_v58 = vunpack.c.l.b16 %v1023_v32 }
 0x497   :  { %v1512_v57 = vpop.eup %1511  ;;  %v1071_v22 = vpack.c.b16 %v1056_v18, %v1055_v39 }
 0x498   :  { %v992_v61 = vmul.f32 %v1512_v57, %v2052_v7 }
 0x499   :  { %1154 = vmatpush.bf16.xpose.msrb.mxu0 %v1133_v26  ;;  %1094 = vmatpush.bf16.xpose.msra.mxu3 %v1071_v22 }
 0x49a   :  { %v1024_v52 = vpack.c.bf16 %v992_v61, %v992_v61 }
 0x49c   :  { %v1117_v5 = vunpack.c.l.b16 %v1024_v52 }
 0x49e   :  { %v1132_v4 = vpack.c.b16 %v1117_v5, %v1116_v58 }
 0x4a1   :  { %v240_v0 = vpop.permute.xlu1 %239  ;;  %1155 = vmatpush.bf16.xpose.msrb.mxu0 %v1132_v4 }
 0x4a2   :  { %v297_v47 = vadd.f32 %v1694_v16, %v240_v0 }
 0x4a3   :  { %v1167_v42 = vpop.permute.xlu0 %1166 }
 0x4a4   :  { %v404_v23 = vpack.c.bf16 %v297_v47, %v297_v47 }
 0x4a6   :  { %1095 = vmatmul.bf16.vlgmr.msra.gmra.mxu3 %v404_v23 }
 0x4a8   :  { %1156 = vmatmul.bf16.vlgmr.msrb.gmra.mxu0 %v405_v19 }
 0x4a9   :  { %v1172_v37 = vpop.permute.xlu1 %1171 }
 0x525   :  { %v1157_v59 = vpop.f32.mrf.mxu0 }
 0x529   :  { %v1096_v24 = vpop.f32.mrf.mxu3 }
 0x52a   :  { %v1161_v7 = vpack.c.bf16 %v1157_v59, %v1096_v24 }
 0x52c   :  { %1189 = vmatpush.bf16.msrb.mxu3 %v1161_v7 }
 0x52d   :  { %v1159_v3 = vpop.f32.mrf.mxu0 }
 0x52f   :  { %1269 = vmatmul.msk.bf16.vlgmr.msrb.gmra.mxu3 %vm272_vm12, %v1289_v27 }
 0x531   :  { %v1098_v35 = vpop.f32.mrf.mxu3 }
 0x5b2   :  { %v1191_v13 = vpop.f32.mrf.mxu3 }
 0x5b3   :  { %v1192_v16 = vadd.f32 %v1191_v13, %v1167_v42 }
 0x5b5   :  { %v1196_v11 = vadd.f32 %v1513_v25, %v1192_v16 }
 0x5b7   :  { %1198 = vst [vmem:[#allocation2] sm:$0xff] %v1196_v11 }
 0x5ba   :  { %v1193_v45 = vpop.f32.mrf.mxu3 }
 0x5bb   :  { %v1194_v6 = vadd.f32 %v1193_v45, %v1172_v37 }
 0x5bd   :  { %v1197_v41 = vadd.f32 %v1514_v60, %v1194_v6 }
 0x5bf   :  { %1199 = vst [vmem:[#allocation2 + $0x8] sm:$0xff] %v1197_v41 }
 0x5c0   :  { %1212 = dma.vmem_to_hbm [thread:$0]  %s1205_s18, 256, %s1207_s2, [#allocation3], %s1545_s23, %s1545_s23, %s1546_s24  }
 0x5c1   :  { %1539 = dma.done.wait [#allocation3], 256  }
 0x5c2   :  { %1540 = vsyncadd [#allocation3], 4294967040 }
 0x5c3   :  { %1217 = vsyncpa [#allocation3], 1 }

</bundles_post_ra>
